<compile_context>
chip_gen: v7x
topology: tpu7x:2x2x1
jax: 0.10.0
libtpu: 0.0.40
codegen_flags: <defaults>
</compile_context>

<pallas_src>
import functools
import math

import jax
import jax.numpy as jnp
from jax.experimental import pallas as pl
from jax.experimental.pallas import tpu as pltpu  # noqa: F401  (TPU backend)


# ----------------------------- fused kernel --------------------------------

def _bert_shard_kernel(x_ref, m_ref,
                       qkvw_ref, qkvb_ref, wo_ref,
                       w1_ref, b1_ref, w2_ref, vecs_ref,
                       pw_ref, pb_ref, fw_ref, fb_ref,
                       o_ref, *, n_layers, num_heads, eps):
    """Full encoder shard + pooler + classifier on a folded [B*S, H] slab."""
    T, H = x_ref.shape
    D = H // num_heads
    scale = 1.0 / math.sqrt(D)

    x = x_ref[...].astype(jnp.float32)     # [T, H] activations (f32 math)
    mask = m_ref[...]                      # [T, T] additive bias (pad + block-diag)

    def layer_norm(y, g, b):
        mu = jnp.mean(y, axis=-1, keepdims=True)
        var = jnp.mean(jnp.square(y - mu), axis=-1, keepdims=True)
        return (y - mu) * jax.lax.rsqrt(var + eps) * g + b

    def gelu(y):
        c = math.sqrt(2.0 / math.pi)
        return 0.5 * y * (1.0 + jnp.tanh(c * (y + 0.044715 * y * y * y)))

    def bdot(a, b_bf16):
        # bf16 operands -> native MXU; f32 accumulation.
        return jnp.dot(a.astype(jnp.bfloat16), b_bf16,
                       preferred_element_type=jnp.float32)

    # Static unroll: shard depth is tiny (L=2).
    # TODO(synk): switch to lax.fori_loop(unroll=True) / a layer grid axis if
    #             the shard grows, to bound vreg live ranges and VMEM.
    for l in range(n_layers):
        vecs = vecs_ref[l]                 # [6, H]: bo, ln1_g, ln1_b, b2, ln2_g, ln2_b

        # ---- self-attention: ONE fused QKV dot, per-head softmax only ----
        qkv = bdot(x, qkvw_ref[l]) + qkvb_ref[l]          # [T, 3H] f32
        ctxs = []
        for h in range(num_heads):
            q = qkv[:, h * D:(h + 1) * D]                  # [T, D]
            k = qkv[:, H + h * D:H + (h + 1) * D]          # [T, D]
            v = qkv[:, 2 * H + h * D:2 * H + (h + 1) * D]  # [T, D]
            # q @ k^T without materializing a transpose.
            s = jax.lax.dot_general(
                q.astype(jnp.bfloat16), k.astype(jnp.bfloat16),
                dimension_numbers=(((1,), (1,)), ((), ())),
                preferred_element_type=jnp.float32) * scale + mask
            s_max = jnp.max(s, axis=-1, keepdims=True)
            p = jnp.exp(s - s_max)
            p = p * pl.reciprocal(jnp.sum(p, axis=-1, keepdims=True), approx=True)
            ctxs.append(bdot(p, v.astype(jnp.bfloat16)))   # [T, D]
        ctx = jnp.concatenate(ctxs, axis=-1)               # [T, H] lane-dense
        attn = bdot(ctx, wo_ref[l]) + vecs[0:1, :]         # fused Wo + bo
        x = layer_norm(attn + x, vecs[1:2, :], vecs[2:3, :])

        # ---- feed-forward ----
        ffn = bdot(x, w1_ref[l]) + b1_ref[l]               # [T, INTER]
        ffn = gelu(ffn)
        ffn = bdot(ffn, w2_ref[l]) + vecs[3:4, :]          # [T, H]
        x = layer_norm(ffn + x, vecs[4:5, :], vecs[5:6, :])

    # ---- pooler (Linear->tanh) + classifier, computed row-wise for all T rows.
    # Row-wise ops commute with row selection: the wrapper keeps only the [CLS]
    # rows.  Output last dim is padded to 128 -> lane-dense unmasked stores.
    pooled = jnp.tanh(bdot(x, pw_ref[...]) + pb_ref[...])  # [T, H]
    logits = bdot(pooled, fw_ref[...]) + fb_ref[...]       # [T, C_PAD]
    o_ref[...] = logits.astype(o_ref.dtype)


# ----------------------------- wrapper --------------------------------------

def model3_forward(params, encoder_layers, extended_attention_mask, *,
                   num_heads, num_classes):
    B, S, H = encoder_layers.shape
    T = B * S
    L = params["qkv_w"].shape[0]
    C_PAD = params["fc_w"].shape[1]

    # Fold batch: [B, S, H] -> [T, H].
    x2 = encoder_layers.reshape(T, H).astype(jnp.float32)

    # Fold the HF extended attention mask ([B,1,1,S], additive 0/-10000) into a
    # single [T, T] additive bias that also blocks cross-batch attention.
    ext = extended_attention_mask.reshape(B, S).astype(jnp.float32)
    row_b = jnp.repeat(jnp.arange(B), S)                       # batch id per row
    same_batch = row_b[:, None] == row_b[None, :]              # [T, T]
    key_bias = jnp.broadcast_to(ext.reshape(1, T), (T, T))     # per-key pad bias
    mask2d = jnp.where(same_batch, key_bias, jnp.float32(-10000.0))

    kernel = functools.partial(_bert_shard_kernel,
                               n_layers=L, num_heads=num_heads, eps=1e-12)

    # Single grid-less pallas_call: every (packed, bf16) weight and all
    # activations are resident in VMEM; no per-step grid overhead.
    out = pl.pallas_call(
        kernel,
        out_shape=jax.ShapeDtypeStruct((T, C_PAD), jnp.float32),
    )(x2, mask2d,
      params["qkv_w"], params["qkv_b"], params["wo_w"],
      params["w1"], params["b1"], params["w2"], params["vecs"],
      params["pool_w"], params["pool_b"], params["fc_w"], params["fc_b"])

    # [CLS] is row b*S of every batch element; slice off the class padding.
    return out.reshape(B, S, C_PAD)[:, 0, :num_classes]


# ----------------------------- params --------------------------------------

def init_params(key, hidden, inter, n_layers, n_heads, n_classes, c_pad):
    ks = jax.random.split(key, 6)

    def w(k, shape):
        return (0.02 * jax.random.normal(k, shape, jnp.float32)).astype(jnp.bfloat16)

    # Packed per-layer vectors [L, 6, H]: bo, ln1_g, ln1_b, b2, ln2_g, ln2_b.
    vecs = jnp.zeros((n_layers, 6, hidden), jnp.float32)
    vecs = vecs.at[:, 1, :].set(1.0)   # ln1 gamma
    vecs = vecs.at[:, 4, :].set(1.0)   # ln2 gamma

    fc_w = 0.02 * jax.random.normal(ks[5], (hidden, n_classes), jnp.float32)
    fc_w = jnp.pad(fc_w, ((0, 0), (0, c_pad - n_classes))).astype(jnp.bfloat16)

    return dict(
        qkv_w=w(ks[0], (n_layers, hidden, 3 * hidden)),        # fused Q|K|V
        qkv_b=jnp.zeros((n_layers, 1, 3 * hidden), jnp.float32),
        wo_w=w(ks[1], (n_layers, hidden, hidden)),              # fused output proj
        w1=w(ks[2], (n_layers, hidden, inter)),
        b1=jnp.zeros((n_layers, 1, inter), jnp.float32),
        w2=w(ks[3], (n_layers, inter, hidden)),
        vecs=vecs,
        pool_w=w(ks[4], (hidden, hidden)),
        pool_b=jnp.zeros((1, hidden), jnp.float32),
        fc_w=fc_w,                                              # padded to c_pad
        fc_b=jnp.zeros((1, c_pad), jnp.float32),
    )


# --------------------------------- main -------------------------------------

if __name__ == "__main__":
    B, S, H = 2, 8, 32           # batch, seq, hidden
    NH, INTER = 4, 128           # heads, FFN intermediate
    N_LAYERS, N_CLASSES = 2, 10  # shard-3 depth, classifier size
    C_PAD = 128                  # lane-dense padded logits width

    key = jax.random.PRNGKey(0)
    k_x, k_p = jax.random.split(key, 2)

    params = init_params(k_p, H, INTER, N_LAYERS, NH, N_CLASSES, C_PAD)
    encoder_layers = jax.random.normal(k_x, (B, S, H), jnp.float32)

    # HF-style extended attention mask: first 6 tokens valid, last 2 padded.
    attn_mask = jnp.concatenate(
        [jnp.ones((B, 6), jnp.float32), jnp.zeros((B, 2), jnp.float32)], axis=1)
    extended_attention_mask = ((1.0 - attn_mask)[:, None, None, :] * -10000.0
                               ).astype(jnp.float32)

    fwd = jax.jit(functools.partial(model3_forward,
                                    num_heads=NH, num_classes=N_CLASSES))
    out = fwd(params, encoder_layers, extended_attention_mask)
    out = jax.block_until_ready(out)

    assert out.shape == (B, N_CLASSES), out.shape
    assert out.dtype == jnp.float32, out.dtype
    print("KERNEL_OK")
</pallas_src>

<mosaic_0001>
module attributes {stable_mosaic.version = 11 : i64} {
  func.func @_bert_shard_kernel(%arg0: memref<16x32xf32, #tpu.memory_space<vmem>>, %arg1: memref<16x16xf32, #tpu.memory_space<vmem>>, %arg2: memref<2x32x96xbf16, #tpu.memory_space<vmem>>, %arg3: memref<2x1x96xf32, #tpu.memory_space<vmem>>, %arg4: memref<2x32x32xbf16, #tpu.memory_space<vmem>>, %arg5: memref<2x32x128xbf16, #tpu.memory_space<vmem>>, %arg6: memref<2x1x128xf32, #tpu.memory_space<vmem>>, %arg7: memref<2x128x32xbf16, #tpu.memory_space<vmem>>, %arg8: memref<2x6x32xf32, #tpu.memory_space<vmem>>, %arg9: memref<32x32xbf16, #tpu.memory_space<vmem>>, %arg10: memref<1x32xf32, #tpu.memory_space<vmem>>, %arg11: memref<32x128xbf16, #tpu.memory_space<vmem>>, %arg12: memref<1x128xf32, #tpu.memory_space<vmem>>, %arg13: memref<16x128xf32, #tpu.memory_space<vmem>>) attributes {dimension_semantics = [], scalar_prefetch = 0 : i64, scratch_operands = 0 : i64, tpu.core_type = #tpu.core_type<tc>} {
    %c0 = arith.constant 0 : index
    %c0_0 = arith.constant 0 : index
    %0 = vector.load %arg0[%c0, %c0_0] : memref<16x32xf32, #tpu.memory_space<vmem>>, vector<16x32xf32>
    %c0_1 = arith.constant 0 : index
    %c0_2 = arith.constant 0 : index
    %1 = vector.load %arg1[%c0_1, %c0_2] : memref<16x16xf32, #tpu.memory_space<vmem>>, vector<16x16xf32>
    %c0_3 = arith.constant 0 : index
    %c0_4 = arith.constant 0 : index
    %c0_5 = arith.constant 0 : index
    %2 = vector.load %arg8[%c0_3, %c0_4, %c0_5] : memref<2x6x32xf32, #tpu.memory_space<vmem>>, vector<1x6x32xf32>
    %3 = vector.shape_cast %2 : vector<1x6x32xf32> to vector<6x32xf32>
    %c0_6 = arith.constant 0 : index
    %c0_7 = arith.constant 0 : index
    %c0_8 = arith.constant 0 : index
    %4 = vector.load %arg2[%c0_6, %c0_7, %c0_8] : memref<2x32x96xbf16, #tpu.memory_space<vmem>>, vector<1x32x96xbf16>
    %5 = vector.shape_cast %4 : vector<1x32x96xbf16> to vector<32x96xbf16>
    %6 = arith.truncf %0 : vector<16x32xf32> to vector<16x32xbf16>
    %cst = arith.constant dense<0.000000e+00> : vector<16x96xf32>
    %7 = tpu.matmul %6, %5, %cst {dimension_numbers = #tpu.dot_dimension_numbers<[1], [0], [0], [1], [0, 0, 1, 1], [], []>} : vector<16x32xbf16>, vector<32x96xbf16>, vector<16x96xf32> -> vector<16x96xf32>
    %c0_9 = arith.constant 0 : index
    %c0_10 = arith.constant 0 : index
    %c0_11 = arith.constant 0 : index
    %8 = vector.load %arg3[%c0_9, %c0_10, %c0_11] : memref<2x1x96xf32, #tpu.memory_space<vmem>>, vector<1x1x96xf32>
    %9 = vector.shape_cast %8 : vector<1x1x96xf32> to vector<1x96xf32>
    %10 = vector.broadcast %9 : vector<1x96xf32> to vector<16x96xf32>
    %11 = arith.addf %7, %10 : vector<16x96xf32>
    %12 = vector.extract_strided_slice %11 {offsets = [0, 0], sizes = [16, 8], strides = [1, 1]} : vector<16x96xf32> to vector<16x8xf32>
    %13 = vector.extract_strided_slice %11 {offsets = [0, 32], sizes = [16, 8], strides = [1, 1]} : vector<16x96xf32> to vector<16x8xf32>
    %14 = vector.extract_strided_slice %11 {offsets = [0, 64], sizes = [16, 8], strides = [1, 1]} : vector<16x96xf32> to vector<16x8xf32>
    %15 = arith.truncf %12 : vector<16x8xf32> to vector<16x8xbf16>
    %16 = arith.truncf %13 : vector<16x8xf32> to vector<16x8xbf16>
    %cst_12 = arith.constant dense<0.000000e+00> : vector<16x16xf32>
    %17 = tpu.matmul %15, %16, %cst_12 {dimension_numbers = #tpu.dot_dimension_numbers<[1], [1], [0], [0], [0, 0, 1, 0], [], []>} : vector<16x8xbf16>, vector<16x8xbf16>, vector<16x16xf32> -> vector<16x16xf32>
    %cst_13 = arith.constant 0.353553385 : f32
    %18 = vector.broadcast %cst_13 : f32 to vector<16x16xf32>
    %19 = arith.mulf %17, %18 : vector<16x16xf32>
    %20 = arith.addf %19, %1 : vector<16x16xf32>
    %cst_14 = arith.constant dense<0xFF800000> : vector<16xf32>
    %21 = vector.multi_reduction <maximumf>, %20, %cst_14 [1] : vector<16x16xf32> to vector<16xf32>
    %22 = vector.shape_cast %21 : vector<16xf32> to vector<16x1xf32>
    %23 = vector.broadcast %22 : vector<16x1xf32> to vector<16x16xf32>
    %24 = arith.subf %20, %23 : vector<16x16xf32>
    %25 = math.exp %24 : vector<16x16xf32>
    %cst_15 = arith.constant dense<0.000000e+00> : vector<16xf32>
    %26 = vector.multi_reduction <add>, %25, %cst_15 [1] : vector<16x16xf32> to vector<16xf32>
    %27 = vector.shape_cast %26 : vector<16xf32> to vector<16x1xf32>
    %28 = tpu.reciprocal %27 {approx = true} : vector<16x1xf32> -> vector<16x1xf32>
    %29 = vector.broadcast %28 : vector<16x1xf32> to vector<16x16xf32>
    %30 = arith.mulf %25, %29 : vector<16x16xf32>
    %31 = arith.truncf %14 : vector<16x8xf32> to vector<16x8xbf16>
    %32 = arith.truncf %30 : vector<16x16xf32> to vector<16x16xbf16>
    %cst_16 = arith.constant dense<0.000000e+00> : vector<16x8xf32>
    %33 = tpu.matmul %32, %31, %cst_16 {dimension_numbers = #tpu.dot_dimension_numbers<[1], [0], [0], [1], [0, 0, 1, 1], [], []>} : vector<16x16xbf16>, vector<16x8xbf16>, vector<16x8xf32> -> vector<16x8xf32>
    %34 = vector.extract_strided_slice %11 {offsets = [0, 8], sizes = [16, 8], strides = [1, 1]} : vector<16x96xf32> to vector<16x8xf32>
    %35 = vector.extract_strided_slice %11 {offsets = [0, 40], sizes = [16, 8], strides = [1, 1]} : vector<16x96xf32> to vector<16x8xf32>
    %36 = vector.extract_strided_slice %11 {offsets = [0, 72], sizes = [16, 8], strides = [1, 1]} : vector<16x96xf32> to vector<16x8xf32>
    %37 = arith.truncf %34 : vector<16x8xf32> to vector<16x8xbf16>
    %38 = arith.truncf %35 : vector<16x8xf32> to vector<16x8xbf16>
    %cst_17 = arith.constant dense<0.000000e+00> : vector<16x16xf32>
    %39 = tpu.matmul %37, %38, %cst_17 {dimension_numbers = #tpu.dot_dimension_numbers<[1], [1], [0], [0], [0, 0, 1, 0], [], []>} : vector<16x8xbf16>, vector<16x8xbf16>, vector<16x16xf32> -> vector<16x16xf32>
    %cst_18 = arith.constant 0.353553385 : f32
    %40 = vector.broadcast %cst_18 : f32 to vector<16x16xf32>
    %41 = arith.mulf %39, %40 : vector<16x16xf32>
    %42 = arith.addf %41, %1 : vector<16x16xf32>
    %cst_19 = arith.constant dense<0xFF800000> : vector<16xf32>
    %43 = vector.multi_reduction <maximumf>, %42, %cst_19 [1] : vector<16x16xf32> to vector<16xf32>
    %44 = vector.shape_cast %43 : vector<16xf32> to vector<16x1xf32>
    %45 = vector.broadcast %44 : vector<16x1xf32> to vector<16x16xf32>
    %46 = arith.subf %42, %45 : vector<16x16xf32>
    %47 = math.exp %46 : vector<16x16xf32>
    %cst_20 = arith.constant dense<0.000000e+00> : vector<16xf32>
    %48 = vector.multi_reduction <add>, %47, %cst_20 [1] : vector<16x16xf32> to vector<16xf32>
    %49 = vector.shape_cast %48 : vector<16xf32> to vector<16x1xf32>
    %50 = tpu.reciprocal %49 {approx = true} : vector<16x1xf32> -> vector<16x1xf32>
    %51 = vector.broadcast %50 : vector<16x1xf32> to vector<16x16xf32>
    %52 = arith.mulf %47, %51 : vector<16x16xf32>
    %53 = arith.truncf %36 : vector<16x8xf32> to vector<16x8xbf16>
    %54 = arith.truncf %52 : vector<16x16xf32> to vector<16x16xbf16>
    %cst_21 = arith.constant dense<0.000000e+00> : vector<16x8xf32>
    %55 = tpu.matmul %54, %53, %cst_21 {dimension_numbers = #tpu.dot_dimension_numbers<[1], [0], [0], [1], [0, 0, 1, 1], [], []>} : vector<16x16xbf16>, vector<16x8xbf16>, vector<16x8xf32> -> vector<16x8xf32>
    %56 = vector.extract_strided_slice %11 {offsets = [0, 16], sizes = [16, 8], strides = [1, 1]} : vector<16x96xf32> to vector<16x8xf32>
    %57 = vector.extract_strided_slice %11 {offsets = [0, 48], sizes = [16, 8], strides = [1, 1]} : vector<16x96xf32> to vector<16x8xf32>
    %58 = vector.extract_strided_slice %11 {offsets = [0, 80], sizes = [16, 8], strides = [1, 1]} : vector<16x96xf32> to vector<16x8xf32>
    %59 = arith.truncf %56 : vector<16x8xf32> to vector<16x8xbf16>
    %60 = arith.truncf %57 : vector<16x8xf32> to vector<16x8xbf16>
    %cst_22 = arith.constant dense<0.000000e+00> : vector<16x16xf32>
    %61 = tpu.matmul %59, %60, %cst_22 {dimension_numbers = #tpu.dot_dimension_numbers<[1], [1], [0], [0], [0, 0, 1, 0], [], []>} : vector<16x8xbf16>, vector<16x8xbf16>, vector<16x16xf32> -> vector<16x16xf32>
    %cst_23 = arith.constant 0.353553385 : f32
    %62 = vector.broadcast %cst_23 : f32 to vector<16x16xf32>
    %63 = arith.mulf %61, %62 : vector<16x16xf32>
    %64 = arith.addf %63, %1 : vector<16x16xf32>
    %cst_24 = arith.constant dense<0xFF800000> : vector<16xf32>
    %65 = vector.multi_reduction <maximumf>, %64, %cst_24 [1] : vector<16x16xf32> to vector<16xf32>
    %66 = vector.shape_cast %65 : vector<16xf32> to vector<16x1xf32>
    %67 = vector.broadcast %66 : vector<16x1xf32> to vector<16x16xf32>
    %68 = arith.subf %64, %67 : vector<16x16xf32>
    %69 = math.exp %68 : vector<16x16xf32>
    %cst_25 = arith.constant dense<0.000000e+00> : vector<16xf32>
    %70 = vector.multi_reduction <add>, %69, %cst_25 [1] : vector<16x16xf32> to vector<16xf32>
    %71 = vector.shape_cast %70 : vector<16xf32> to vector<16x1xf32>
    %72 = tpu.reciprocal %71 {approx = true} : vector<16x1xf32> -> vector<16x1xf32>
    %73 = vector.broadcast %72 : vector<16x1xf32> to vector<16x16xf32>
    %74 = arith.mulf %69, %73 : vector<16x16xf32>
    %75 = arith.truncf %58 : vector<16x8xf32> to vector<16x8xbf16>
    %76 = arith.truncf %74 : vector<16x16xf32> to vector<16x16xbf16>
    %cst_26 = arith.constant dense<0.000000e+00> : vector<16x8xf32>
    %77 = tpu.matmul %76, %75, %cst_26 {dimension_numbers = #tpu.dot_dimension_numbers<[1], [0], [0], [1], [0, 0, 1, 1], [], []>} : vector<16x16xbf16>, vector<16x8xbf16>, vector<16x8xf32> -> vector<16x8xf32>
    %78 = vector.extract_strided_slice %11 {offsets = [0, 24], sizes = [16, 8], strides = [1, 1]} : vector<16x96xf32> to vector<16x8xf32>
    %79 = vector.extract_strided_slice %11 {offsets = [0, 56], sizes = [16, 8], strides = [1, 1]} : vector<16x96xf32> to vector<16x8xf32>
    %80 = vector.extract_strided_slice %11 {offsets = [0, 88], sizes = [16, 8], strides = [1, 1]} : vector<16x96xf32> to vector<16x8xf32>
    %81 = arith.truncf %78 : vector<16x8xf32> to vector<16x8xbf16>
    %82 = arith.truncf %79 : vector<16x8xf32> to vector<16x8xbf16>
    %cst_27 = arith.constant dense<0.000000e+00> : vector<16x16xf32>
    %83 = tpu.matmul %81, %82, %cst_27 {dimension_numbers = #tpu.dot_dimension_numbers<[1], [1], [0], [0], [0, 0, 1, 0], [], []>} : vector<16x8xbf16>, vector<16x8xbf16>, vector<16x16xf32> -> vector<16x16xf32>
    %cst_28 = arith.constant 0.353553385 : f32
    %84 = vector.broadcast %cst_28 : f32 to vector<16x16xf32>
    %85 = arith.mulf %83, %84 : vector<16x16xf32>
    %86 = arith.addf %85, %1 : vector<16x16xf32>
    %cst_29 = arith.constant dense<0xFF800000> : vector<16xf32>
    %87 = vector.multi_reduction <maximumf>, %86, %cst_29 [1] : vector<16x16xf32> to vector<16xf32>
    %88 = vector.shape_cast %87 : vector<16xf32> to vector<16x1xf32>
    %89 = vector.broadcast %88 : vector<16x1xf32> to vector<16x16xf32>
    %90 = arith.subf %86, %89 : vector<16x16xf32>
    %91 = math.exp %90 : vector<16x16xf32>
    %cst_30 = arith.constant dense<0.000000e+00> : vector<16xf32>
    %92 = vector.multi_reduction <add>, %91, %cst_30 [1] : vector<16x16xf32> to vector<16xf32>
    %93 = vector.shape_cast %92 : vector<16xf32> to vector<16x1xf32>
    %94 = tpu.reciprocal %93 {approx = true} : vector<16x1xf32> -> vector<16x1xf32>
    %95 = vector.broadcast %94 : vector<16x1xf32> to vector<16x16xf32>
    %96 = arith.mulf %91, %95 : vector<16x16xf32>
    %97 = arith.truncf %80 : vector<16x8xf32> to vector<16x8xbf16>
    %98 = arith.truncf %96 : vector<16x16xf32> to vector<16x16xbf16>
    %cst_31 = arith.constant dense<0.000000e+00> : vector<16x8xf32>
    %99 = tpu.matmul %98, %97, %cst_31 {dimension_numbers = #tpu.dot_dimension_numbers<[1], [0], [0], [1], [0, 0, 1, 1], [], []>} : vector<16x16xbf16>, vector<16x8xbf16>, vector<16x8xf32> -> vector<16x8xf32>
    %100 = tpu.concatenate %33, %55, %77, %99 in 1 : vector<16x8xf32>, vector<16x8xf32>, vector<16x8xf32>, vector<16x8xf32> -> vector<16x32xf32>
    %c0_32 = arith.constant 0 : index
    %c0_33 = arith.constant 0 : index
    %c0_34 = arith.constant 0 : index
    %101 = vector.load %arg4[%c0_32, %c0_33, %c0_34] : memref<2x32x32xbf16, #tpu.memory_space<vmem>>, vector<1x32x32xbf16>
    %102 = vector.shape_cast %101 : vector<1x32x32xbf16> to vector<32x32xbf16>
    %103 = arith.truncf %100 : vector<16x32xf32> to vector<16x32xbf16>
    %cst_35 = arith.constant dense<0.000000e+00> : vector<16x32xf32>
    %104 = tpu.matmul %103, %102, %cst_35 {dimension_numbers = #tpu.dot_dimension_numbers<[1], [0], [0], [1], [0, 0, 1, 1], [], []>} : vector<16x32xbf16>, vector<32x32xbf16>, vector<16x32xf32> -> vector<16x32xf32>
    %105 = vector.extract_strided_slice %3 {offsets = [0, 0], sizes = [1, 32], strides = [1, 1]} : vector<6x32xf32> to vector<1x32xf32>
    %106 = vector.broadcast %105 : vector<1x32xf32> to vector<16x32xf32>
    %107 = arith.addf %104, %106 : vector<16x32xf32>
    %108 = arith.addf %107, %0 : vector<16x32xf32>
    %109 = vector.extract_strided_slice %3 {offsets = [1, 0], sizes = [1, 32], strides = [1, 1]} : vector<6x32xf32> to vector<1x32xf32>
    %110 = vector.extract_strided_slice %3 {offsets = [2, 0], sizes = [1, 32], strides = [1, 1]} : vector<6x32xf32> to vector<1x32xf32>
    %cst_36 = arith.constant dense<0.000000e+00> : vector<16xf32>
    %111 = vector.multi_reduction <add>, %108, %cst_36 [1] : vector<16x32xf32> to vector<16xf32>
    %112 = vector.shape_cast %111 : vector<16xf32> to vector<16x1xf32>
    %cst_37 = arith.constant 3.200000e+01 : f32
    %113 = vector.broadcast %cst_37 : f32 to vector<16x1xf32>
    %114 = arith.divf %112, %113 : vector<16x1xf32>
    %115 = vector.broadcast %114 : vector<16x1xf32> to vector<16x32xf32>
    %116 = arith.subf %108, %115 : vector<16x32xf32>
    %117 = arith.mulf %116, %116 : vector<16x32xf32>
    %cst_38 = arith.constant dense<0.000000e+00> : vector<16xf32>
    %118 = vector.multi_reduction <add>, %117, %cst_38 [1] : vector<16x32xf32> to vector<16xf32>
    %119 = vector.shape_cast %118 : vector<16xf32> to vector<16x1xf32>
    %cst_39 = arith.constant 3.200000e+01 : f32
    %120 = vector.broadcast %cst_39 : f32 to vector<16x1xf32>
    %121 = arith.divf %119, %120 : vector<16x1xf32>
    %122 = vector.broadcast %114 : vector<16x1xf32> to vector<16x32xf32>
    %123 = arith.subf %108, %122 : vector<16x32xf32>
    %cst_40 = arith.constant 9.99999996E-13 : f32
    %124 = vector.broadcast %cst_40 : f32 to vector<16x1xf32>
    %125 = arith.addf %121, %124 : vector<16x1xf32>
    %126 = math.rsqrt %125 : vector<16x1xf32>
    %127 = vector.broadcast %126 : vector<16x1xf32> to vector<16x32xf32>
    %128 = arith.mulf %123, %127 : vector<16x32xf32>
    %129 = vector.broadcast %109 : vector<1x32xf32> to vector<16x32xf32>
    %130 = arith.mulf %128, %129 : vector<16x32xf32>
    %131 = vector.broadcast %110 : vector<1x32xf32> to vector<16x32xf32>
    %132 = arith.addf %130, %131 : vector<16x32xf32>
    %c0_41 = arith.constant 0 : index
    %c0_42 = arith.constant 0 : index
    %c0_43 = arith.constant 0 : index
    %133 = vector.load %arg5[%c0_41, %c0_42, %c0_43] : memref<2x32x128xbf16, #tpu.memory_space<vmem>>, vector<1x32x128xbf16>
    %134 = vector.shape_cast %133 : vector<1x32x128xbf16> to vector<32x128xbf16>
    %135 = arith.truncf %132 : vector<16x32xf32> to vector<16x32xbf16>
    %cst_44 = arith.constant dense<0.000000e+00> : vector<16x128xf32>
    %136 = tpu.matmul %135, %134, %cst_44 {dimension_numbers = #tpu.dot_dimension_numbers<[1], [0], [0], [1], [0, 0, 1, 1], [], []>} : vector<16x32xbf16>, vector<32x128xbf16>, vector<16x128xf32> -> vector<16x128xf32>
    %c0_45 = arith.constant 0 : index
    %c0_46 = arith.constant 0 : index
    %c0_47 = arith.constant 0 : index
    %137 = vector.load %arg6[%c0_45, %c0_46, %c0_47] : memref<2x1x128xf32, #tpu.memory_space<vmem>>, vector<1x1x128xf32>
    %138 = vector.shape_cast %137 : vector<1x1x128xf32> to vector<1x128xf32>
    %139 = vector.broadcast %138 : vector<1x128xf32> to vector<16x128xf32>
    %140 = arith.addf %136, %139 : vector<16x128xf32>
    %cst_48 = arith.constant 5.000000e-01 : f32
    %141 = vector.broadcast %cst_48 : f32 to vector<16x128xf32>
    %142 = arith.mulf %141, %140 : vector<16x128xf32>
    %cst_49 = arith.constant 4.471500e-02 : f32
    %143 = vector.broadcast %cst_49 : f32 to vector<16x128xf32>
    %144 = arith.mulf %143, %140 : vector<16x128xf32>
    %145 = arith.mulf %144, %140 : vector<16x128xf32>
    %146 = arith.mulf %145, %140 : vector<16x128xf32>
    %147 = arith.addf %140, %146 : vector<16x128xf32>
    %cst_50 = arith.constant 0.797884583 : f32
    %148 = vector.broadcast %cst_50 : f32 to vector<16x128xf32>
    %149 = arith.mulf %148, %147 : vector<16x128xf32>
    %150 = math.tanh %149 : vector<16x128xf32>
    %cst_51 = arith.constant 1.000000e+00 : f32
    %151 = vector.broadcast %cst_51 : f32 to vector<16x128xf32>
    %152 = arith.addf %151, %150 : vector<16x128xf32>
    %153 = arith.mulf %142, %152 : vector<16x128xf32>
    %c0_52 = arith.constant 0 : index
    %c0_53 = arith.constant 0 : index
    %c0_54 = arith.constant 0 : index
    %154 = vector.load %arg7[%c0_52, %c0_53, %c0_54] : memref<2x128x32xbf16, #tpu.memory_space<vmem>>, vector<1x128x32xbf16>
    %155 = vector.shape_cast %154 : vector<1x128x32xbf16> to vector<128x32xbf16>
    %156 = arith.truncf %153 : vector<16x128xf32> to vector<16x128xbf16>
    %cst_55 = arith.constant dense<0.000000e+00> : vector<16x32xf32>
    %157 = tpu.matmul %156, %155, %cst_55 {dimension_numbers = #tpu.dot_dimension_numbers<[1], [0], [0], [1], [0, 0, 1, 1], [], []>} : vector<16x128xbf16>, vector<128x32xbf16>, vector<16x32xf32> -> vector<16x32xf32>
    %158 = vector.extract_strided_slice %3 {offsets = [3, 0], sizes = [1, 32], strides = [1, 1]} : vector<6x32xf32> to vector<1x32xf32>
    %159 = vector.broadcast %158 : vector<1x32xf32> to vector<16x32xf32>
    %160 = arith.addf %157, %159 : vector<16x32xf32>
    %161 = arith.addf %160, %132 : vector<16x32xf32>
    %162 = vector.extract_strided_slice %3 {offsets = [4, 0], sizes = [1, 32], strides = [1, 1]} : vector<6x32xf32> to vector<1x32xf32>
    %163 = vector.extract_strided_slice %3 {offsets = [5, 0], sizes = [1, 32], strides = [1, 1]} : vector<6x32xf32> to vector<1x32xf32>
    %cst_56 = arith.constant dense<0.000000e+00> : vector<16xf32>
    %164 = vector.multi_reduction <add>, %161, %cst_56 [1] : vector<16x32xf32> to vector<16xf32>
    %165 = vector.shape_cast %164 : vector<16xf32> to vector<16x1xf32>
    %cst_57 = arith.constant 3.200000e+01 : f32
    %166 = vector.broadcast %cst_57 : f32 to vector<16x1xf32>
    %167 = arith.divf %165, %166 : vector<16x1xf32>
    %168 = vector.broadcast %167 : vector<16x1xf32> to vector<16x32xf32>
    %169 = arith.subf %161, %168 : vector<16x32xf32>
    %170 = arith.mulf %169, %169 : vector<16x32xf32>
    %cst_58 = arith.constant dense<0.000000e+00> : vector<16xf32>
    %171 = vector.multi_reduction <add>, %170, %cst_58 [1] : vector<16x32xf32> to vector<16xf32>
    %172 = vector.shape_cast %171 : vector<16xf32> to vector<16x1xf32>
    %cst_59 = arith.constant 3.200000e+01 : f32
    %173 = vector.broadcast %cst_59 : f32 to vector<16x1xf32>
    %174 = arith.divf %172, %173 : vector<16x1xf32>
    %175 = vector.broadcast %167 : vector<16x1xf32> to vector<16x32xf32>
    %176 = arith.subf %161, %175 : vector<16x32xf32>
    %cst_60 = arith.constant 9.99999996E-13 : f32
    %177 = vector.broadcast %cst_60 : f32 to vector<16x1xf32>
    %178 = arith.addf %174, %177 : vector<16x1xf32>
    %179 = math.rsqrt %178 : vector<16x1xf32>
    %180 = vector.broadcast %179 : vector<16x1xf32> to vector<16x32xf32>
    %181 = arith.mulf %176, %180 : vector<16x32xf32>
    %182 = vector.broadcast %162 : vector<1x32xf32> to vector<16x32xf32>
    %183 = arith.mulf %181, %182 : vector<16x32xf32>
    %184 = vector.broadcast %163 : vector<1x32xf32> to vector<16x32xf32>
    %185 = arith.addf %183, %184 : vector<16x32xf32>
    %c1 = arith.constant 1 : index
    %c0_61 = arith.constant 0 : index
    %c0_62 = arith.constant 0 : index
    %186 = vector.load %arg8[%c1, %c0_61, %c0_62] : memref<2x6x32xf32, #tpu.memory_space<vmem>>, vector<1x6x32xf32>
    %187 = vector.shape_cast %186 : vector<1x6x32xf32> to vector<6x32xf32>
    %c1_63 = arith.constant 1 : index
    %c0_64 = arith.constant 0 : index
    %c0_65 = arith.constant 0 : index
    %188 = vector.load %arg2[%c1_63, %c0_64, %c0_65] : memref<2x32x96xbf16, #tpu.memory_space<vmem>>, vector<1x32x96xbf16>
    %189 = vector.shape_cast %188 : vector<1x32x96xbf16> to vector<32x96xbf16>
    %190 = arith.truncf %185 : vector<16x32xf32> to vector<16x32xbf16>
    %cst_66 = arith.constant dense<0.000000e+00> : vector<16x96xf32>
    %191 = tpu.matmul %190, %189, %cst_66 {dimension_numbers = #tpu.dot_dimension_numbers<[1], [0], [0], [1], [0, 0, 1, 1], [], []>} : vector<16x32xbf16>, vector<32x96xbf16>, vector<16x96xf32> -> vector<16x96xf32>
    %c1_67 = arith.constant 1 : index
    %c0_68 = arith.constant 0 : index
    %c0_69 = arith.constant 0 : index
    %192 = vector.load %arg3[%c1_67, %c0_68, %c0_69] : memref<2x1x96xf32, #tpu.memory_space<vmem>>, vector<1x1x96xf32>
    %193 = vector.shape_cast %192 : vector<1x1x96xf32> to vector<1x96xf32>
    %194 = vector.broadcast %193 : vector<1x96xf32> to vector<16x96xf32>
    %195 = arith.addf %191, %194 : vector<16x96xf32>
    %196 = vector.extract_strided_slice %195 {offsets = [0, 0], sizes = [16, 8], strides = [1, 1]} : vector<16x96xf32> to vector<16x8xf32>
    %197 = vector.extract_strided_slice %195 {offsets = [0, 32], sizes = [16, 8], strides = [1, 1]} : vector<16x96xf32> to vector<16x8xf32>
    %198 = vector.extract_strided_slice %195 {offsets = [0, 64], sizes = [16, 8], strides = [1, 1]} : vector<16x96xf32> to vector<16x8xf32>
    %199 = arith.truncf %196 : vector<16x8xf32> to vector<16x8xbf16>
    %200 = arith.truncf %197 : vector<16x8xf32> to vector<16x8xbf16>
    %cst_70 = arith.constant dense<0.000000e+00> : vector<16x16xf32>
    %201 = tpu.matmul %199, %200, %cst_70 {dimension_numbers = #tpu.dot_dimension_numbers<[1], [1], [0], [0], [0, 0, 1, 0], [], []>} : vector<16x8xbf16>, vector<16x8xbf16>, vector<16x16xf32> -> vector<16x16xf32>
    %cst_71 = arith.constant 0.353553385 : f32
    %202 = vector.broadcast %cst_71 : f32 to vector<16x16xf32>
    %203 = arith.mulf %201, %202 : vector<16x16xf32>
    %204 = arith.addf %203, %1 : vector<16x16xf32>
    %cst_72 = arith.constant dense<0xFF800000> : vector<16xf32>
    %205 = vector.multi_reduction <maximumf>, %204, %cst_72 [1] : vector<16x16xf32> to vector<16xf32>
    %206 = vector.shape_cast %205 : vector<16xf32> to vector<16x1xf32>
    %207 = vector.broadcast %206 : vector<16x1xf32> to vector<16x16xf32>
    %208 = arith.subf %204, %207 : vector<16x16xf32>
    %209 = math.exp %208 : vector<16x16xf32>
    %cst_73 = arith.constant dense<0.000000e+00> : vector<16xf32>
    %210 = vector.multi_reduction <add>, %209, %cst_73 [1] : vector<16x16xf32> to vector<16xf32>
    %211 = vector.shape_cast %210 : vector<16xf32> to vector<16x1xf32>
    %212 = tpu.reciprocal %211 {approx = true} : vector<16x1xf32> -> vector<16x1xf32>
    %213 = vector.broadcast %212 : vector<16x1xf32> to vector<16x16xf32>
    %214 = arith.mulf %209, %213 : vector<16x16xf32>
    %215 = arith.truncf %198 : vector<16x8xf32> to vector<16x8xbf16>
    %216 = arith.truncf %214 : vector<16x16xf32> to vector<16x16xbf16>
    %cst_74 = arith.constant dense<0.000000e+00> : vector<16x8xf32>
    %217 = tpu.matmul %216, %215, %cst_74 {dimension_numbers = #tpu.dot_dimension_numbers<[1], [0], [0], [1], [0, 0, 1, 1], [], []>} : vector<16x16xbf16>, vector<16x8xbf16>, vector<16x8xf32> -> vector<16x8xf32>
    %218 = vector.extract_strided_slice %195 {offsets = [0, 8], sizes = [16, 8], strides = [1, 1]} : vector<16x96xf32> to vector<16x8xf32>
    %219 = vector.extract_strided_slice %195 {offsets = [0, 40], sizes = [16, 8], strides = [1, 1]} : vector<16x96xf32> to vector<16x8xf32>
    %220 = vector.extract_strided_slice %195 {offsets = [0, 72], sizes = [16, 8], strides = [1, 1]} : vector<16x96xf32> to vector<16x8xf32>
    %221 = arith.truncf %218 : vector<16x8xf32> to vector<16x8xbf16>
    %222 = arith.truncf %219 : vector<16x8xf32> to vector<16x8xbf16>
    %cst_75 = arith.constant dense<0.000000e+00> : vector<16x16xf32>
    %223 = tpu.matmul %221, %222, %cst_75 {dimension_numbers = #tpu.dot_dimension_numbers<[1], [1], [0], [0], [0, 0, 1, 0], [], []>} : vector<16x8xbf16>, vector<16x8xbf16>, vector<16x16xf32> -> vector<16x16xf32>
    %cst_76 = arith.constant 0.353553385 : f32
    %224 = vector.broadcast %cst_76 : f32 to vector<16x16xf32>
    %225 = arith.mulf %223, %224 : vector<16x16xf32>
    %226 = arith.addf %225, %1 : vector<16x16xf32>
    %cst_77 = arith.constant dense<0xFF800000> : vector<16xf32>
    %227 = vector.multi_reduction <maximumf>, %226, %cst_77 [1] : vector<16x16xf32> to vector<16xf32>
    %228 = vector.shape_cast %227 : vector<16xf32> to vector<16x1xf32>
    %229 = vector.broadcast %228 : vector<16x1xf32> to vector<16x16xf32>
    %230 = arith.subf %226, %229 : vector<16x16xf32>
    %231 = math.exp %230 : vector<16x16xf32>
    %cst_78 = arith.constant dense<0.000000e+00> : vector<16xf32>
    %232 = vector.multi_reduction <add>, %231, %cst_78 [1] : vector<16x16xf32> to vector<16xf32>
    %233 = vector.shape_cast %232 : vector<16xf32> to vector<16x1xf32>
    %234 = tpu.reciprocal %233 {approx = true} : vector<16x1xf32> -> vector<16x1xf32>
    %235 = vector.broadcast %234 : vector<16x1xf32> to vector<16x16xf32>
    %236 = arith.mulf %231, %235 : vector<16x16xf32>
    %237 = arith.truncf %220 : vector<16x8xf32> to vector<16x8xbf16>
    %238 = arith.truncf %236 : vector<16x16xf32> to vector<16x16xbf16>
    %cst_79 = arith.constant dense<0.000000e+00> : vector<16x8xf32>
    %239 = tpu.matmul %238, %237, %cst_79 {dimension_numbers = #tpu.dot_dimension_numbers<[1], [0], [0], [1], [0, 0, 1, 1], [], []>} : vector<16x16xbf16>, vector<16x8xbf16>, vector<16x8xf32> -> vector<16x8xf32>
    %240 = vector.extract_strided_slice %195 {offsets = [0, 16], sizes = [16, 8], strides = [1, 1]} : vector<16x96xf32> to vector<16x8xf32>
    %241 = vector.extract_strided_slice %195 {offsets = [0, 48], sizes = [16, 8], strides = [1, 1]} : vector<16x96xf32> to vector<16x8xf32>
    %242 = vector.extract_strided_slice %195 {offsets = [0, 80], sizes = [16, 8], strides = [1, 1]} : vector<16x96xf32> to vector<16x8xf32>
    %243 = arith.truncf %240 : vector<16x8xf32> to vector<16x8xbf16>
    %244 = arith.truncf %241 : vector<16x8xf32> to vector<16x8xbf16>
    %cst_80 = arith.constant dense<0.000000e+00> : vector<16x16xf32>
    %245 = tpu.matmul %243, %244, %cst_80 {dimension_numbers = #tpu.dot_dimension_numbers<[1], [1], [0], [0], [0, 0, 1, 0], [], []>} : vector<16x8xbf16>, vector<16x8xbf16>, vector<16x16xf32> -> vector<16x16xf32>
    %cst_81 = arith.constant 0.353553385 : f32
    %246 = vector.broadcast %cst_81 : f32 to vector<16x16xf32>
    %247 = arith.mulf %245, %246 : vector<16x16xf32>
    %248 = arith.addf %247, %1 : vector<16x16xf32>
    %cst_82 = arith.constant dense<0xFF800000> : vector<16xf32>
    %249 = vector.multi_reduction <maximumf>, %248, %cst_82 [1] : vector<16x16xf32> to vector<16xf32>
    %250 = vector.shape_cast %249 : vector<16xf32> to vector<16x1xf32>
    %251 = vector.broadcast %250 : vector<16x1xf32> to vector<16x16xf32>
    %252 = arith.subf %248, %251 : vector<16x16xf32>
    %253 = math.exp %252 : vector<16x16xf32>
    %cst_83 = arith.constant dense<0.000000e+00> : vector<16xf32>
    %254 = vector.multi_reduction <add>, %253, %cst_83 [1] : vector<16x16xf32> to vector<16xf32>
    %255 = vector.shape_cast %254 : vector<16xf32> to vector<16x1xf32>
    %256 = tpu.reciprocal %255 {approx = true} : vector<16x1xf32> -> vector<16x1xf32>
    %257 = vector.broadcast %256 : vector<16x1xf32> to vector<16x16xf32>
    %258 = arith.mulf %253, %257 : vector<16x16xf32>
    %259 = arith.truncf %242 : vector<16x8xf32> to vector<16x8xbf16>
    %260 = arith.truncf %258 : vector<16x16xf32> to vector<16x16xbf16>
    %cst_84 = arith.constant dense<0.000000e+00> : vector<16x8xf32>
    %261 = tpu.matmul %260, %259, %cst_84 {dimension_numbers = #tpu.dot_dimension_numbers<[1], [0], [0], [1], [0, 0, 1, 1], [], []>} : vector<16x16xbf16>, vector<16x8xbf16>, vector<16x8xf32> -> vector<16x8xf32>
    %262 = vector.extract_strided_slice %195 {offsets = [0, 24], sizes = [16, 8], strides = [1, 1]} : vector<16x96xf32> to vector<16x8xf32>
    %263 = vector.extract_strided_slice %195 {offsets = [0, 56], sizes = [16, 8], strides = [1, 1]} : vector<16x96xf32> to vector<16x8xf32>
    %264 = vector.extract_strided_slice %195 {offsets = [0, 88], sizes = [16, 8], strides = [1, 1]} : vector<16x96xf32> to vector<16x8xf32>
    %265 = arith.truncf %262 : vector<16x8xf32> to vector<16x8xbf16>
    %266 = arith.truncf %263 : vector<16x8xf32> to vector<16x8xbf16>
    %cst_85 = arith.constant dense<0.000000e+00> : vector<16x16xf32>
    %267 = tpu.matmul %265, %266, %cst_85 {dimension_numbers = #tpu.dot_dimension_numbers<[1], [1], [0], [0], [0, 0, 1, 0], [], []>} : vector<16x8xbf16>, vector<16x8xbf16>, vector<16x16xf32> -> vector<16x16xf32>
    %cst_86 = arith.constant 0.353553385 : f32
    %268 = vector.broadcast %cst_86 : f32 to vector<16x16xf32>
    %269 = arith.mulf %267, %268 : vector<16x16xf32>
    %270 = arith.addf %269, %1 : vector<16x16xf32>
    %cst_87 = arith.constant dense<0xFF800000> : vector<16xf32>
    %271 = vector.multi_reduction <maximumf>, %270, %cst_87 [1] : vector<16x16xf32> to vector<16xf32>
    %272 = vector.shape_cast %271 : vector<16xf32> to vector<16x1xf32>
    %273 = vector.broadcast %272 : vector<16x1xf32> to vector<16x16xf32>
    %274 = arith.subf %270, %273 : vector<16x16xf32>
    %275 = math.exp %274 : vector<16x16xf32>
    %cst_88 = arith.constant dense<0.000000e+00> : vector<16xf32>
    %276 = vector.multi_reduction <add>, %275, %cst_88 [1] : vector<16x16xf32> to vector<16xf32>
    %277 = vector.shape_cast %276 : vector<16xf32> to vector<16x1xf32>
    %278 = tpu.reciprocal %277 {approx = true} : vector<16x1xf32> -> vector<16x1xf32>
    %279 = vector.broadcast %278 : vector<16x1xf32> to vector<16x16xf32>
    %280 = arith.mulf %275, %279 : vector<16x16xf32>
    %281 = arith.truncf %264 : vector<16x8xf32> to vector<16x8xbf16>
    %282 = arith.truncf %280 : vector<16x16xf32> to vector<16x16xbf16>
    %cst_89 = arith.constant dense<0.000000e+00> : vector<16x8xf32>
    %283 = tpu.matmul %282, %281, %cst_89 {dimension_numbers = #tpu.dot_dimension_numbers<[1], [0], [0], [1], [0, 0, 1, 1], [], []>} : vector<16x16xbf16>, vector<16x8xbf16>, vector<16x8xf32> -> vector<16x8xf32>
    %284 = tpu.concatenate %217, %239, %261, %283 in 1 : vector<16x8xf32>, vector<16x8xf32>, vector<16x8xf32>, vector<16x8xf32> -> vector<16x32xf32>
    %c1_90 = arith.constant 1 : index
    %c0_91 = arith.constant 0 : index
    %c0_92 = arith.constant 0 : index
    %285 = vector.load %arg4[%c1_90, %c0_91, %c0_92] : memref<2x32x32xbf16, #tpu.memory_space<vmem>>, vector<1x32x32xbf16>
    %286 = vector.shape_cast %285 : vector<1x32x32xbf16> to vector<32x32xbf16>
    %287 = arith.truncf %284 : vector<16x32xf32> to vector<16x32xbf16>
    %cst_93 = arith.constant dense<0.000000e+00> : vector<16x32xf32>
    %288 = tpu.matmul %287, %286, %cst_93 {dimension_numbers = #tpu.dot_dimension_numbers<[1], [0], [0], [1], [0, 0, 1, 1], [], []>} : vector<16x32xbf16>, vector<32x32xbf16>, vector<16x32xf32> -> vector<16x32xf32>
    %289 = vector.extract_strided_slice %187 {offsets = [0, 0], sizes = [1, 32], strides = [1, 1]} : vector<6x32xf32> to vector<1x32xf32>
    %290 = vector.broadcast %289 : vector<1x32xf32> to vector<16x32xf32>
    %291 = arith.addf %288, %290 : vector<16x32xf32>
    %292 = arith.addf %291, %185 : vector<16x32xf32>
    %293 = vector.extract_strided_slice %187 {offsets = [1, 0], sizes = [1, 32], strides = [1, 1]} : vector<6x32xf32> to vector<1x32xf32>
    %294 = vector.extract_strided_slice %187 {offsets = [2, 0], sizes = [1, 32], strides = [1, 1]} : vector<6x32xf32> to vector<1x32xf32>
    %cst_94 = arith.constant dense<0.000000e+00> : vector<16xf32>
    %295 = vector.multi_reduction <add>, %292, %cst_94 [1] : vector<16x32xf32> to vector<16xf32>
    %296 = vector.shape_cast %295 : vector<16xf32> to vector<16x1xf32>
    %cst_95 = arith.constant 3.200000e+01 : f32
    %297 = vector.broadcast %cst_95 : f32 to vector<16x1xf32>
    %298 = arith.divf %296, %297 : vector<16x1xf32>
    %299 = vector.broadcast %298 : vector<16x1xf32> to vector<16x32xf32>
    %300 = arith.subf %292, %299 : vector<16x32xf32>
    %301 = arith.mulf %300, %300 : vector<16x32xf32>
    %cst_96 = arith.constant dense<0.000000e+00> : vector<16xf32>
    %302 = vector.multi_reduction <add>, %301, %cst_96 [1] : vector<16x32xf32> to vector<16xf32>
    %303 = vector.shape_cast %302 : vector<16xf32> to vector<16x1xf32>
    %cst_97 = arith.constant 3.200000e+01 : f32
    %304 = vector.broadcast %cst_97 : f32 to vector<16x1xf32>
    %305 = arith.divf %303, %304 : vector<16x1xf32>
    %306 = vector.broadcast %298 : vector<16x1xf32> to vector<16x32xf32>
    %307 = arith.subf %292, %306 : vector<16x32xf32>
    %cst_98 = arith.constant 9.99999996E-13 : f32
    %308 = vector.broadcast %cst_98 : f32 to vector<16x1xf32>
    %309 = arith.addf %305, %308 : vector<16x1xf32>
    %310 = math.rsqrt %309 : vector<16x1xf32>
    %311 = vector.broadcast %310 : vector<16x1xf32> to vector<16x32xf32>
    %312 = arith.mulf %307, %311 : vector<16x32xf32>
    %313 = vector.broadcast %293 : vector<1x32xf32> to vector<16x32xf32>
    %314 = arith.mulf %312, %313 : vector<16x32xf32>
    %315 = vector.broadcast %294 : vector<1x32xf32> to vector<16x32xf32>
    %316 = arith.addf %314, %315 : vector<16x32xf32>
    %c1_99 = arith.constant 1 : index
    %c0_100 = arith.constant 0 : index
    %c0_101 = arith.constant 0 : index
    %317 = vector.load %arg5[%c1_99, %c0_100, %c0_101] : memref<2x32x128xbf16, #tpu.memory_space<vmem>>, vector<1x32x128xbf16>
    %318 = vector.shape_cast %317 : vector<1x32x128xbf16> to vector<32x128xbf16>
    %319 = arith.truncf %316 : vector<16x32xf32> to vector<16x32xbf16>
    %cst_102 = arith.constant dense<0.000000e+00> : vector<16x128xf32>
    %320 = tpu.matmul %319, %318, %cst_102 {dimension_numbers = #tpu.dot_dimension_numbers<[1], [0], [0], [1], [0, 0, 1, 1], [], []>} : vector<16x32xbf16>, vector<32x128xbf16>, vector<16x128xf32> -> vector<16x128xf32>
    %c1_103 = arith.constant 1 : index
    %c0_104 = arith.constant 0 : index
    %c0_105 = arith.constant 0 : index
    %321 = vector.load %arg6[%c1_103, %c0_104, %c0_105] : memref<2x1x128xf32, #tpu.memory_space<vmem>>, vector<1x1x128xf32>
    %322 = vector.shape_cast %321 : vector<1x1x128xf32> to vector<1x128xf32>
    %323 = vector.broadcast %322 : vector<1x128xf32> to vector<16x128xf32>
    %324 = arith.addf %320, %323 : vector<16x128xf32>
    %cst_106 = arith.constant 5.000000e-01 : f32
    %325 = vector.broadcast %cst_106 : f32 to vector<16x128xf32>
    %326 = arith.mulf %325, %324 : vector<16x128xf32>
    %cst_107 = arith.constant 4.471500e-02 : f32
    %327 = vector.broadcast %cst_107 : f32 to vector<16x128xf32>
    %328 = arith.mulf %327, %324 : vector<16x128xf32>
    %329 = arith.mulf %328, %324 : vector<16x128xf32>
    %330 = arith.mulf %329, %324 : vector<16x128xf32>
    %331 = arith.addf %324, %330 : vector<16x128xf32>
    %cst_108 = arith.constant 0.797884583 : f32
    %332 = vector.broadcast %cst_108 : f32 to vector<16x128xf32>
    %333 = arith.mulf %332, %331 : vector<16x128xf32>
    %334 = math.tanh %333 : vector<16x128xf32>
    %cst_109 = arith.constant 1.000000e+00 : f32
    %335 = vector.broadcast %cst_109 : f32 to vector<16x128xf32>
    %336 = arith.addf %335, %334 : vector<16x128xf32>
    %337 = arith.mulf %326, %336 : vector<16x128xf32>
    %c1_110 = arith.constant 1 : index
    %c0_111 = arith.constant 0 : index
    %c0_112 = arith.constant 0 : index
    %338 = vector.load %arg7[%c1_110, %c0_111, %c0_112] : memref<2x128x32xbf16, #tpu.memory_space<vmem>>, vector<1x128x32xbf16>
    %339 = vector.shape_cast %338 : vector<1x128x32xbf16> to vector<128x32xbf16>
    %340 = arith.truncf %337 : vector<16x128xf32> to vector<16x128xbf16>
    %cst_113 = arith.constant dense<0.000000e+00> : vector<16x32xf32>
    %341 = tpu.matmul %340, %339, %cst_113 {dimension_numbers = #tpu.dot_dimension_numbers<[1], [0], [0], [1], [0, 0, 1, 1], [], []>} : vector<16x128xbf16>, vector<128x32xbf16>, vector<16x32xf32> -> vector<16x32xf32>
    %342 = vector.extract_strided_slice %187 {offsets = [3, 0], sizes = [1, 32], strides = [1, 1]} : vector<6x32xf32> to vector<1x32xf32>
    %343 = vector.broadcast %342 : vector<1x32xf32> to vector<16x32xf32>
    %344 = arith.addf %341, %343 : vector<16x32xf32>
    %345 = arith.addf %344, %316 : vector<16x32xf32>
    %346 = vector.extract_strided_slice %187 {offsets = [4, 0], sizes = [1, 32], strides = [1, 1]} : vector<6x32xf32> to vector<1x32xf32>
    %347 = vector.extract_strided_slice %187 {offsets = [5, 0], sizes = [1, 32], strides = [1, 1]} : vector<6x32xf32> to vector<1x32xf32>
    %cst_114 = arith.constant dense<0.000000e+00> : vector<16xf32>
    %348 = vector.multi_reduction <add>, %345, %cst_114 [1] : vector<16x32xf32> to vector<16xf32>
    %349 = vector.shape_cast %348 : vector<16xf32> to vector<16x1xf32>
    %cst_115 = arith.constant 3.200000e+01 : f32
    %350 = vector.broadcast %cst_115 : f32 to vector<16x1xf32>
    %351 = arith.divf %349, %350 : vector<16x1xf32>
    %352 = vector.broadcast %351 : vector<16x1xf32> to vector<16x32xf32>
    %353 = arith.subf %345, %352 : vector<16x32xf32>
    %354 = arith.mulf %353, %353 : vector<16x32xf32>
    %cst_116 = arith.constant dense<0.000000e+00> : vector<16xf32>
    %355 = vector.multi_reduction <add>, %354, %cst_116 [1] : vector<16x32xf32> to vector<16xf32>
    %356 = vector.shape_cast %355 : vector<16xf32> to vector<16x1xf32>
    %cst_117 = arith.constant 3.200000e+01 : f32
    %357 = vector.broadcast %cst_117 : f32 to vector<16x1xf32>
    %358 = arith.divf %356, %357 : vector<16x1xf32>
    %359 = vector.broadcast %351 : vector<16x1xf32> to vector<16x32xf32>
    %360 = arith.subf %345, %359 : vector<16x32xf32>
    %cst_118 = arith.constant 9.99999996E-13 : f32
    %361 = vector.broadcast %cst_118 : f32 to vector<16x1xf32>
    %362 = arith.addf %358, %361 : vector<16x1xf32>
    %363 = math.rsqrt %362 : vector<16x1xf32>
    %364 = vector.broadcast %363 : vector<16x1xf32> to vector<16x32xf32>
    %365 = arith.mulf %360, %364 : vector<16x32xf32>
    %366 = vector.broadcast %346 : vector<1x32xf32> to vector<16x32xf32>
    %367 = arith.mulf %365, %366 : vector<16x32xf32>
    %368 = vector.broadcast %347 : vector<1x32xf32> to vector<16x32xf32>
    %369 = arith.addf %367, %368 : vector<16x32xf32>
    %c0_119 = arith.constant 0 : index
    %c0_120 = arith.constant 0 : index
    %370 = vector.load %arg9[%c0_119, %c0_120] : memref<32x32xbf16, #tpu.memory_space<vmem>>, vector<32x32xbf16>
    %371 = arith.truncf %369 : vector<16x32xf32> to vector<16x32xbf16>
    %cst_121 = arith.constant dense<0.000000e+00> : vector<16x32xf32>
    %372 = tpu.matmul %371, %370, %cst_121 {dimension_numbers = #tpu.dot_dimension_numbers<[1], [0], [0], [1], [0, 0, 1, 1], [], []>} : vector<16x32xbf16>, vector<32x32xbf16>, vector<16x32xf32> -> vector<16x32xf32>
    %c0_122 = arith.constant 0 : index
    %c0_123 = arith.constant 0 : index
    %373 = vector.load %arg10[%c0_122, %c0_123] : memref<1x32xf32, #tpu.memory_space<vmem>>, vector<1x32xf32>
    %374 = vector.broadcast %373 : vector<1x32xf32> to vector<16x32xf32>
    %375 = arith.addf %372, %374 : vector<16x32xf32>
    %376 = math.tanh %375 : vector<16x32xf32>
    %c0_124 = arith.constant 0 : index
    %c0_125 = arith.constant 0 : index
    %377 = vector.load %arg11[%c0_124, %c0_125] : memref<32x128xbf16, #tpu.memory_space<vmem>>, vector<32x128xbf16>
    %378 = arith.truncf %376 : vector<16x32xf32> to vector<16x32xbf16>
    %cst_126 = arith.constant dense<0.000000e+00> : vector<16x128xf32>
    %379 = tpu.matmul %378, %377, %cst_126 {dimension_numbers = #tpu.dot_dimension_numbers<[1], [0], [0], [1], [0, 0, 1, 1], [], []>} : vector<16x32xbf16>, vector<32x128xbf16>, vector<16x128xf32> -> vector<16x128xf32>
    %c0_127 = arith.constant 0 : index
    %c0_128 = arith.constant 0 : index
    %380 = vector.load %arg12[%c0_127, %c0_128] : memref<1x128xf32, #tpu.memory_space<vmem>>, vector<1x128xf32>
    %381 = vector.broadcast %380 : vector<1x128xf32> to vector<16x128xf32>
    %382 = arith.addf %379, %381 : vector<16x128xf32>
    %c0_129 = arith.constant 0 : index
    %c0_130 = arith.constant 0 : index
    %383 = vector.load %arg13[%c0_129, %c0_130] : memref<16x128xf32, #tpu.memory_space<vmem>>, vector<16x128xf32>
    tpu.vector_store %arg13[%c0_129, %c0_130], %382 {strides = array<i32>} : memref<16x128xf32, #tpu.memory_space<vmem>>, vector<16x128xf32>,
    return
  }
}

</mosaic_0001>

<bundles_post_ra>
// kernel: eq.8
= control target key start
LH: loop header
LB: loop body
LE: loop exit
PB: predicated region body
PF: predicated region fallthrough
CT: control target
= control target key end

     0   :  { %vm7_vm0 = vcmask 64512   ;;  %vm13_vm1 = vcmask 130112   ;;  %s39_s0 = inlined_call_operand.vmem [shape: s32[2,8], index: 0, kind: input, shape index: {}]   ;;  %s40_s1 = inlined_call_operand.vmem [shape: s32[16], index: 1, kind: output, shape index: {}]  }
   0x1   :  { %v4_v0 = vld [vmem:[%s39_s0] sm:$0x3]  ;;  %s22_s0 = smov 8  }
   0x2   :  { %5 = vst [vmem:[#allocation1] sm:$0x3] %v4_v0 }
   0x9   :  { %v10_v1 = vld [vmem:[#allocation1 + $0x1] sm:$0x1]   ;;  %v6_v2 = vld [vmem:[#allocation1] sm:$0x1]  }
   0xa   :  { %11 = vrot.lane.b32.xlu0 %v10_v1, %s22_s0  ;;  %8 = vst.msk [vmem:[#allocation0] sm:$0x1] %vm7_vm0, %v6_v2  }
  0x7c   :  { %v12_v3 = vpop.permute.xlu0 %11  }
  0x7d   :  { %14 = vst.msk [vmem:[#allocation0] sm:$0x1] %vm13_vm1, %v12_v3  }
  0x84   :  { %v18_v4 = vld [vmem:[#allocation0] sm:$0x1] }
  0x85   :  { %20 = vst [vmem:[%s40_s1] sm:$0x1] %v18_v4 }

// kernel: model3_forward.1
= control target key start
LH: loop header
LB: loop body
LE: loop exit
PB: predicated region body
PF: predicated region fallthrough
CT: control target
= control target key end

     0   :  { %v2624_v0 = vmov 0.0   ;;  %vm2625_vm0 = vmmov 0   ;;  %vm74_vm1 = vcmask 261120   ;;  %s2627_s18 = smov 96   ;;  %s2628_s19 = smov 80   ;;  %vm123_vm2 = vcmask 64512   ;;  %s3210_s2 = inlined_call_operand.vmem [shape: bf16[2,32,96], index: 2, kind: input, shape index: {}]   ;;  %s3211_s0 = inlined_call_operand.vmem [shape: f32[16,32], index: 0, kind: input, shape index: {}]   ;;  %s3212_s3 = inlined_call_operand.vmem [shape: f32[2,1,96], index: 3, kind: input, shape index: {}]   ;;  %s3213_s1 = inlined_call_operand.vmem [shape: f32[16,16], index: 1, kind: input, shape index: {}]   ;;  %s3214_s4 = inlined_call_operand.vmem [shape: bf16[2,32,32], index: 4, kind: input, shape index: {}]   ;;  %s3215_s8 = inlined_call_operand.vmem [shape: f32[2,6,32], index: 8, kind: input, shape index: {}]   ;;  %s3216_s5 = inlined_call_operand.vmem [shape: bf16[2,32,128], index: 5, kind: input, shape index: {}]   ;;  %s3217_s7 = inlined_call_operand.vmem [shape: bf16[2,128,32], index: 7, kind: input, shape index: {}]   ;;  %s3218_s6 = inlined_call_operand.vmem [shape: f32[2,1,128], index: 6, kind: input, shape index: {}]   ;;  %s3219_s9 = inlined_call_operand.vmem [shape: bf16[32,32], index: 9, kind: input, shape index: {}]   ;;  %s3220_s11 = inlined_call_operand.vmem [shape: bf16[32,128], index: 11, kind: input, shape index: {}]   ;;  %s3221_s10 = inlined_call_operand.vmem [shape: f32[1,32], index: 10, kind: input, shape index: {}]   ;;  %s3222_s12 = inlined_call_operand.vmem [shape: f32[1,128], index: 12, kind: input, shape index: {}]   ;;  %s3223_s13 = inlined_call_operand.vmem [shape: f32[16,128], index: 13, kind: output, shape index: {}]  }
   0x1   :  { %2252 = vmatprep.subr.bf16.mxu1 %v2624_v0  ;;  %v2498_v1 = vld [vmem:[%s3210_s2] sm:$0xff]   ;;  %2256 = vmatprep.mubr.msk.bf16.mxu1 %vm2625_vm0, %v2624_v0  ;;  %v2499_v2 = vld [vmem:[%s3210_s2 + $0x8] sm:$0xff]   ;;  %s2629_s20 = smov 88   ;;  %s2630_s21 = smov 72   ;;  %vm175_vm3 = vcmask 130048   ;;  %vm649_vm4 = vcmask 195584  }
   0x2   :  { %2266 = vmatprep.subr.bf16.mxu0 %v2624_v0  ;;  %2268 = vmatprep.mubr.msk.bf16.mxu0 %vm2625_vm0, %v2624_v0  ;;  %v2725_v3 = vld [vmem:[%s3211_s0] sm:$0xff]  ;;  %v2730_v4 = vld [vmem:[%s3211_s0 + $0x8] sm:$0xff]  ;;  %s2626_s0 = smov 120   ;;  %s2631_s22 = smov 112  }
   0x3   :  { %2253 = vmatpush3.bf16.msra.mxu1 %v2498_v1  ;;  %v54_v5 = vpack.c.bf16 %v2730_v4, %v2725_v3  ;;  %v2085_v6 = vld [vmem:[%s3212_s3] ss:$0 sm:$0xff]  ;;  %s2632_s23 = smov 104   ;;  %v2787_v30 = vld [vmem:[%s3213_s1 + $0x8] sm:$0xff]  ;;  %s2633_s28 = smov 56  }
   0x4   :  { %2254 = vmatprep.subr.bf16.mxu1 %v2624_v0  ;;  %v2782_v26 = vld [vmem:[%s3213_s1] sm:$0xff]  ;;  %s2634_s29 = smov 64   ;;  %s3227_s30 = smov 48  }
   0x5   :  { %s2636_s14 = smov 40   ;;  %s3226_s17 = smov 8  }
   0x6   :  { %s3225_s26 = smov 16   ;;  %s3224_s27 = smov 24  }
   0x7   :  { %2255 = vmatpush3.bf16.msra.mxu1 %v2499_v2 }
   0x8   :  { %2260 = vmatprep.subr.bf16.mxu1 %v2624_v0 }
   0xa   :  { %2257 = vmatmul.mubr.msk.bf16.vlgmr.msra.gmra.mrb[0].mxu1 %vm74_vm1, %v54_v5 }
   0xb   :  { %2262 = vmatprep.mubr.msk.bf16.mxu1 %vm2625_vm0, %v2624_v0 }
  0xdd   :  { %v112_v7 = vpop.f32.mrb[0].mxu1 }
  0xde   :  { %v2258_v8 = vpop.f32.mrb[1].mxu1  ;;  %v113_v10 = vadd.f32 %v2085_v6, %v112_v7 }
  0xdf   :  { %v115_v9 = vpop.f32.mrb[2].mxu1 }
  0xe0   :  { %v116_v11 = vadd.f32 %v2085_v6, %v115_v9  ;;  %v2259_v12 = vpop.f32.mrb[3].mxu1 }
  0xe2   :  { %v2742_v13 = vpack.c.bf16 %v116_v11, %v113_v10 }
  0xe4   :  { %246 = vrot.lane.b32.xlu1 %v2742_v13, %s2626_s0  ;;  %121 = vrot.lane.b32.xlu0 %v2742_v13, %s2627_s18 }
  0xe8   :  { %373 = vrot.lane.b32.xlu1 %v2742_v13, %s2628_s19  ;;  %248 = vrot.lane.b32.xlu0 %v2742_v13, %s2629_s20 }
  0xec   :  { %498 = vrot.lane.b32.xlu1 %v2742_v13, %s2630_s21  ;;  %371 = vrot.lane.b32.xlu0 %v2742_v13, %s2631_s22 }
  0xf0   :  { %496 = vrot.lane.b32.xlu0 %v2742_v13, %s2632_s23 }
 0x156   :  { %v122_v14 = vpop.permute.xlu0 %121  ;;  %v247_v17 = vpop.permute.xlu1 %246 }
 0x157   :  { %v128_v15 = vsel %vm123_vm2, %v122_v14, 0 }
 0x158   :  { %2261 = vmatpush3.bf16.xpose.msra.mxu1 %v128_v15 }
 0x159   :  { %2272 = vmatprep.subr.bf16.mxu1 %v2624_v0 }
 0x15a   :  { %v249_v16 = vpop.permute.xlu0 %248  ;;  %v374_v19 = vpop.permute.xlu1 %373 }
 0x15b   :  { %v254_v18 = vsel %vm123_vm2, %v249_v16, 0  ;;  %v379_v20 = vsel %vm123_vm2, %v374_v19, 0 }
 0x15e   :  { %v499_v21 = vpop.permute.xlu1 %498  ;;  %v372_v22 = vpop.permute.xlu0 %371 }
 0x15f   :  { %2263 = vmatmul.mubr.msk.bf16.vlgmr.msra.gmra.mrb[4].mxu1 %vm123_vm2, %v2742_v13  ;;  %v504_v23 = vsel %vm123_vm2, %v499_v21, 0 }
 0x160   :  { %2273 = vmatpush3.bf16.xpose.msra.mxu1 %v254_v18  ;;  %2274 = vmatprep.mubr.msk.bf16.mxu1 %vm2625_vm0, %v2624_v0 }
 0x161   :  { %2284 = vmatprep.subr.bf16.mxu1 %v2624_v0 }
 0x162   :  { %v497_v24 = vpop.permute.xlu0 %496 }
 0x167   :  { %2275 = vmatmul.mubr.msk.bf16.vlgmr.msra.gmra.mrb[8].mxu1 %vm123_vm2, %v247_v17 }
 0x168   :  { %2285 = vmatpush3.bf16.xpose.msra.mxu1 %v379_v20  ;;  %2286 = vmatprep.mubr.msk.bf16.mxu1 %vm2625_vm0, %v2624_v0 }
 0x169   :  { %2296 = vmatprep.subr.bf16.mxu1 %v2624_v0 }
 0x16f   :  { %2287 = vmatmul.mubr.msk.bf16.vlgmr.msra.gmra.mrb[12].mxu1 %vm123_vm2, %v372_v22 }
 0x170   :  { %2297 = vmatpush3.bf16.xpose.msra.mxu1 %v504_v23  ;;  %2298 = vmatprep.mubr.msk.bf16.mxu1 %vm2625_vm0, %v2624_v0 }
 0x171   :  { %2308 = vmatprep.subr.bf16.mxu1 %v2624_v0 }
 0x177   :  { %2299 = vmatmul.mubr.msk.bf16.vlgmr.msra.gmra.mrb[16].mxu1 %vm123_vm2, %v497_v24 }
 0x178   :  { %2312 = vmatprep.mubr.msk.bf16.mxu1 %vm2625_vm0, %v2624_v0 }
 0x232   :  { %v164_v25 = vpop.f32.mrb[4].mxu1 }
 0x233   :  { %v171_v27 = vmul.f32 0.35355338, %v164_v25  ;;  %v2264_v28 = vpop.f32.mrb[5].mxu1 }
 0x234   :  { %v167_v29 = vpop.f32.mrb[6].mxu1 }
 0x235   :  { %v172_v31 = vmul.f32 0.35355338, %v167_v29  ;;  %v2265_v32 = vpop.f32.mrb[7].mxu1  ;;  %v173_v33 = vadd.f32 %v171_v27, %v2782_v26 }
 0x237   :  { %v176_v34 = vsel %vm175_vm3, %v173_v33, -inf  ;;  %v174_v35 = vadd.f32 %v172_v31, %v2787_v30 }
 0x238   :  { %177 = vmax.xlane.f32.xlu1 %v176_v34 }
 0x239   :  { %v179_v36 = vsel %vm175_vm3, %v174_v35, -inf }
 0x23a   :  { %180 = vmax.xlane.f32.xlu0 %v179_v36  ;;  %v290_v37 = vpop.f32.mrb[8].mxu1 }
 0x23b   :  { %v297_v38 = vmul.f32 0.35355338, %v290_v37  ;;  %v2276_v39 = vpop.f32.mrb[9].mxu1 }
 0x23c   :  { %v293_v40 = vpop.f32.mrb[10].mxu1 }
 0x23d   :  { %v298_v41 = vmul.f32 0.35355338, %v293_v40  ;;  %v2277_v42 = vpop.f32.mrb[11].mxu1  ;;  %v299_v43 = vadd.f32 %v297_v38, %v2782_v26 }
 0x23f   :  { %v301_v44 = vsel %vm175_vm3, %v299_v43, -inf  ;;  %v300_v45 = vadd.f32 %v298_v41, %v2787_v30 }
 0x240   :  { %302 = vmax.xlane.f32.xlu0 %v301_v44 }
 0x241   :  { %v304_v46 = vsel %vm175_vm3, %v300_v45, -inf }
 0x242   :  { %305 = vmax.xlane.f32.xlu1 %v304_v46  ;;  %v415_v47 = vpop.f32.mrb[12].mxu1 }
 0x243   :  { %v422_v48 = vmul.f32 0.35355338, %v415_v47  ;;  %v2288_v49 = vpop.f32.mrb[13].mxu1 }
 0x244   :  { %v418_v50 = vpop.f32.mrb[14].mxu1 }
 0x245   :  { %v423_v51 = vmul.f32 0.35355338, %v418_v50  ;;  %v2289_v52 = vpop.f32.mrb[15].mxu1  ;;  %v424_v53 = vadd.f32 %v422_v48, %v2782_v26 }
 0x247   :  { %v426_v54 = vsel %vm175_vm3, %v424_v53, -inf  ;;  %v425_v55 = vadd.f32 %v423_v51, %v2787_v30 }
 0x248   :  { %427 = vmax.xlane.f32.xlu0 %v426_v54 }
 0x249   :  { %v429_v56 = vsel %vm175_vm3, %v425_v55, -inf }
 0x24a   :  { %430 = vmax.xlane.f32.xlu1 %v429_v56  ;;  %v540_v57 = vpop.f32.mrb[16].mxu1 }
 0x24b   :  { %v547_v58 = vmul.f32 0.35355338, %v540_v57  ;;  %v2300_v59 = vpop.f32.mrb[17].mxu1 }
 0x24c   :  { %v543_v60 = vpop.f32.mrb[18].mxu1 }
 0x24d   :  { %v548_v61 = vmul.f32 0.35355338, %v543_v60  ;;  %v2301_v62 = vpop.f32.mrb[19].mxu1  ;;  %v549_v63 = vadd.f32 %v547_v58, %v2782_v26 }
 0x24f   :  { %v551_v1 = vsel %vm175_vm3, %v549_v63, -inf  ;;  %v550_v2 = vadd.f32 %v548_v61, %v2787_v30 }
 0x250   :  { %552 = vmax.xlane.f32.xlu0 %v551_v1 }
 0x251   :  { %v554_v5 = vsel %vm175_vm3, %v550_v2, -inf }
 0x252   :  { %555 = vmax.xlane.f32.xlu1 %v554_v5 }
 0x2c5   :  { %v178_v6 = vpop.xlane.xlu1 %177 }
 0x2c6   :  { %v182_v7 = vsub.f32 %v173_v33, %v178_v6 }
 0x2c7   :  { %v181_v8 = vpop.xlane.xlu0 %180 }
 0x2c8   :  { %v184_v9 = vmul.f32 1.442695, %v182_v7  ;;  %v183_v10 = vsub.f32 %v174_v35, %v181_v8 }
 0x2ca   :  { %2530 = vpow2.f32 %v184_v9  ;;  %v186_v11 = vmul.f32 1.442695, %v183_v10 }
 0x2cc   :  { %2532 = vpow2.f32 %v186_v11 }
 0x2cd   :  { %v303_v12 = vpop.xlane.xlu0 %302 }
 0x2ce   :  { %v307_v14 = vsub.f32 %v299_v43, %v303_v12 }
 0x2cf   :  { %v306_v22 = vpop.xlane.xlu1 %305 }
 0x2d0   :  { %v309_v15 = vmul.f32 1.442695, %v307_v14  ;;  %v308_v23 = vsub.f32 %v300_v45, %v306_v22 }
 0x2d2   :  { %2534 = vpow2.f32 %v309_v15  ;;  %v311_v27 = vmul.f32 1.442695, %v308_v23 }
 0x2d4   :  { %v2531_v16 = vpop.eup %2530  ;;  %2536 = vpow2.f32 %v311_v27 }
 0x2d5   :  { %v188_v17 = vsel %vm175_vm3, %v2531_v16, 0.0  ;;  %v428_v25 = vpop.xlane.xlu0 %427 }
 0x2d6   :  { %v2533_v18 = vpop.eup %2532  ;;  %189 = vadd.xlane.f32.xlu0 %v188_v17  ;;  %v432_v31 = vsub.f32 %v424_v53, %v428_v25 }
 0x2d7   :  { %v191_v19 = vsel %vm175_vm3, %v2533_v18, 0.0  ;;  %v431_v24 = vpop.xlane.xlu1 %430 }
 0x2d8   :  { %192 = vadd.xlane.f32.xlu1 %v191_v19  ;;  %v433_v28 = vsub.f32 %v425_v55, %v431_v24  ;;  %v434_v35 = vmul.f32 1.442695, %v432_v31  ;;  %v2500_v31 = vld [vmem:[%s3214_s4] sm:$0xff]  }
 0x2d9   :  { %2309 = vmatpush3.bf16.msra.mxu1 %v2500_v31 }
 0x2da   :  { %v436_v33 = vmul.f32 1.442695, %v433_v28  ;;  %2310 = vmatprep.subr.bf16.mxu1 %v2624_v0 }
 0x2dc   :  { %v2807_v20 = vpop.eup %2534  ;;  %2538 = vpow2.f32 %v436_v33 }
 0x2dd   :  { %v313_v21 = vsel %vm175_vm3, %v2807_v20, 0.0  ;;  %v553_v32 = vpop.xlane.xlu0 %552  ;;  %2540 = vpow2.f32 %v434_v35 }
 0x2de   :  { %314 = vadd.xlane.f32.xlu0 %v313_v21  ;;  %v557_v36 = vsub.f32 %v549_v63, %v553_v32  ;;  %v2537_v39 = vpop.eup %2536 }
 0x2df   :  { %v556_v29 = vpop.xlane.xlu1 %555  ;;  %v316_v40 = vsel %vm175_vm3, %v2537_v39, 0.0 }
 0x2e0   :  { %v558_v34 = vsub.f32 %v550_v2, %v556_v29  ;;  %v559_v38 = vmul.f32 1.442695, %v557_v36 }
 0x2e2   :  { %v561_v37 = vmul.f32 1.442695, %v558_v34  ;;  %v2501_v34 = vld [vmem:[%s3214_s4 + $0x8] sm:$0xff]  }
 0x2e3   :  { %2311 = vmatpush3.bf16.msra.mxu1 %v2501_v34 }
 0x2e4   :  { %2542 = vpow2.f32 %v561_v37  ;;  %2324 = vmatprep.subr.bf16.mxu1 %v2624_v0 }
 0x2e5   :  { %2544 = vpow2.f32 %v559_v38 }
 0x2e6   :  { %v2539_v41 = vpop.eup %2538 }
 0x2e7   :  { %v2541_v42 = vpop.eup %2540  ;;  %v441_v43 = vsel %vm175_vm3, %v2539_v41, 0.0 }
 0x2e8   :  { %v438_v45 = vsel %vm175_vm3, %v2541_v42, 0.0 }
 0x2e9   :  { %324 = vrot.lane.b32.xlu1 %v2742_v13, %s2633_s28 }
 0x2ee   :  { %v2817_v44 = vpop.eup %2542 }
 0x2ef   :  { %v2545_v46 = vpop.eup %2544  ;;  %v566_v47 = vsel %vm175_vm3, %v2817_v44, 0.0 }
 0x2f0   :  { %v563_v48 = vsel %vm175_vm3, %v2545_v46, 0.0 }
 0x2f4   :  { %199 = vrot.lane.b32.xlu0 %v2742_v13, %s2634_s29 }
 0x30d   :  { %317 = vadd.xlane.f32.xlu1 %v316_v40 }
 0x311   :  { %442 = vadd.xlane.f32.xlu1 %v441_v43 }
 0x313   :  { %439 = vadd.xlane.f32.xlu0 %v438_v45 }
 0x315   :  { %567 = vadd.xlane.f32.xlu1 %v566_v47 }
 0x317   :  { %564 = vadd.xlane.f32.xlu0 %v563_v48 }
 0x326   :  { %449 = vrot.lane.b32.xlu1 %v2742_v13, %s3227_s30 }
 0x32d   :  { %574 = vrot.lane.b32.xlu0 %v2742_v13, %s2636_s14 }
 0x363   :  { %v190_v49 = vpop.xlane.xlu0 %189 }
 0x364   :  { %2546 = vrcp.f32 %v190_v49 }
 0x365   :  { %v193_v50 = vpop.xlane.xlu1 %192 }
 0x366   :  { %2548 = vrcp.f32 %v193_v50 }
 0x369   :  { %v325_v58 = vpop.permute.xlu1 %324 }
 0x36b   :  { %v315_v51 = vpop.xlane.xlu0 %314 }
 0x36c   :  { %2550 = vrcp.f32 %v315_v51 }
 0x36e   :  { %v2547_v52 = vpop.eup %2546 }
 0x36f   :  { %v200_v53 = vpop.permute.xlu0 %199  ;;  %v196_v55 = vmul.f32 %v2547_v52, %v2531_v16 }
 0x370   :  { %v2549_v54 = vpop.eup %2548  ;;  %2267 = vmatpush3.bf16.msra.mxu0 %v200_v53 }
 0x371   :  { %2278 = vmatprep.subr.bf16.mxu0 %v2624_v0  ;;  %v197_v56 = vmul.f32 %v2549_v54, %v2533_v18 }
 0x373   :  { %v198_v57 = vpack.c.bf16 %v197_v56, %v196_v55 }
 0x375   :  { %2269 = vmatmul.mubr.msk.bf16.vlgmr.msra.gmra.mrb[0].mxu0 %vm175_vm3, %v198_v57 }
 0x376   :  { %2279 = vmatpush3.bf16.msra.mxu0 %v325_v58  ;;  %2280 = vmatprep.mubr.msk.bf16.mxu0 %vm2625_vm0, %v2624_v0  ;;  %v2551_v61 = vpop.eup %2550 }
 0x377   :  { %2290 = vmatprep.subr.bf16.mxu0 %v2624_v0  ;;  %v321_v2 = vmul.f32 %v2551_v61, %v2807_v20  ;;  %v2871_v61 = vld [vmem:[%s3215_s8] sm:$0x3f] }
 0x39a   :  { %v318_v13 = vpop.xlane.xlu1 %317 }
 0x39b   :  { %2552 = vrcp.f32 %v318_v13  ;;  %v657_v13 = vlaneseq }
 0x39e   :  { %v443_v59 = vpop.xlane.xlu1 %442 }
 0x39f   :  { %2554 = vrcp.f32 %v443_v59  ;;  %v2865_v59 = vshrl.u32 %v657_v13, 7 }
 0x3a0   :  { %v440_v60 = vpop.xlane.xlu0 %439 }
 0x3a1   :  { %2556 = vrcp.f32 %v440_v60  ;;  %v659_v60 = vsub.s32 0, %v2865_v59  ;;  %v748_v31 = vsub.s32 1, %v2865_v59 }
 0x3a2   :  { %v568_v62 = vpop.xlane.xlu1 %567 }
 0x3a4   :  { %v565_v63 = vpop.xlane.xlu0 %564 }
 0x3a5   :  { %v2553_v1 = vpop.eup %2552  ;;  %2558 = vrcp.f32 %v565_v63 }
 0x3a6   :  { %v322_v5 = vmul.f32 %v2553_v1, %v2537_v39  ;;  %2560 = vrcp.f32 %v568_v62  ;;  %v450_v8 = vpop.permute.xlu1 %449  ;;  %v660_v62 = vrot.slane %v2871_v61, %v659_v60 }
 0x3a8   :  { %v323_v6 = vpack.c.bf16 %v322_v5, %v321_v2  ;;  %v575_v15 = vpop.permute.xlu0 %574 }
 0x3a9   :  { %v2555_v7 = vpop.eup %2554 }
 0x3aa   :  { %2281 = vmatmul.mubr.msk.bf16.vlgmr.msra.gmra.mrb[4].mxu0 %vm175_vm3, %v323_v6  ;;  %v447_v11 = vmul.f32 %v2555_v7, %v2539_v41 }
 0x3ab   :  { %v2557_v9 = vpop.eup %2556  ;;  %2291 = vmatpush3.bf16.msra.mxu0 %v450_v8  ;;  %2292 = vmatprep.mubr.msk.bf16.mxu0 %vm2625_vm0, %v2624_v0 }
 0x3ac   :  { %v446_v10 = vmul.f32 %v2557_v9, %v2541_v42  ;;  %2302 = vmatprep.subr.bf16.mxu0 %v2624_v0 }
 0x3ae   :  { %v448_v12 = vpack.c.bf16 %v447_v11, %v446_v10 }
 0x3af   :  { %v2559_v14 = vpop.eup %2558 }
 0x3b0   :  { %v2561_v16 = vpop.eup %2560  ;;  %v571_v17 = vmul.f32 %v2559_v14, %v2545_v46 }
 0x3b1   :  { %v572_v18 = vmul.f32 %v2561_v16, %v2817_v44 }
 0x3b2   :  { %2293 = vmatmul.mubr.msk.bf16.vlgmr.msra.gmra.mrb[8].mxu0 %vm175_vm3, %v448_v12 }
 0x3b3   :  { %2303 = vmatpush3.bf16.msra.mxu0 %v575_v15  ;;  %2304 = vmatprep.mubr.msk.bf16.mxu0 %vm2625_vm0, %v2624_v0  ;;  %v573_v19 = vpack.c.bf16 %v572_v18, %v571_v17 }
 0x3b4   :  { %2316 = vmatprep.subr.bf16.mxu0 %v2624_v0 }
 0x3ba   :  { %2305 = vmatmul.mubr.msk.bf16.vlgmr.msra.gmra.mrb[12].mxu0 %vm175_vm3, %v573_v19 }
 0x3bb   :  { %2320 = vmatprep.mubr.msk.bf16.mxu0 %vm2625_vm0, %v2624_v0 }
 0x448   :  { %v239_v20 = vpop.f32.mrb[0].mxu0 }
 0x449   :  { %v2270_v21 = vpop.f32.mrb[1].mxu0 }
 0x44a   :  { %v242_v22 = vpop.f32.mrb[2].mxu0 }
 0x44b   :  { %v2271_v23 = vpop.f32.mrb[3].mxu0 }
 0x47d   :  { %v364_v24 = vpop.f32.mrb[4].mxu0 }
 0x47e   :  { %v2282_v25 = vpop.f32.mrb[5].mxu0 }
 0x47f   :  { %v367_v27 = vpop.f32.mrb[6].mxu0 }
 0x480   :  { %v2468_v28 = vpack.i.bf16 %v367_v27, %v364_v24  ;;  %v2283_v29 = vpop.f32.mrb[7].mxu0 }
 0x482   :  { %2469 = vrot.lane.b32.xlu1 %v2468_v28, %s3226_s17 }
 0x485   :  { %v489_v32 = vpop.f32.mrb[8].mxu0 }
 0x486   :  { %v2294_v33 = vpop.f32.mrb[9].mxu0 }
 0x487   :  { %v492_v35 = vpop.f32.mrb[10].mxu0  ;;  %v749_v33 = vrot.slane %v2871_v61, %v748_v31 }
 0x488   :  { %v2473_v36 = vpack.i.bf16 %v492_v35, %v489_v32  ;;  %v2295_v37 = vpop.f32.mrb[11].mxu0  ;;  %v754_v35 = vsub.s32 2, %v2865_v59 }
 0x48a   :  { %2474 = vrot.lane.b32.xlu0 %v2473_v36, %s3225_s26 }
 0x48d   :  { %v614_v38 = vpop.f32.mrb[12].mxu0 }
 0x48e   :  { %v2306_v39 = vpop.f32.mrb[13].mxu0 }
 0x48f   :  { %v617_v40 = vpop.f32.mrb[14].mxu0  ;;  %v755_v39 = vrot.slane %v2871_v61, %v754_v35 }
 0x490   :  { %v2478_v41 = vpack.i.bf16 %v617_v40, %v614_v38  ;;  %v2307_v42 = vpop.f32.mrb[15].mxu0 }
 0x492   :  { %2479 = vrot.lane.b32.xlu1 %v2478_v41, %s3224_s27 }
 0x4f4   :  { %v2470_v43 = vpop.permute.xlu1 %2469 }
 0x4f5   :  { %v2472_v45 = vunpack.i.h.bf16 %v2470_v43  ;;  %v2471_v46 = vunpack.i.l.bf16 %v2470_v43 }
 0x4f7   :  { %v646_v50 = vsel %vm123_vm2, %v242_v22, %v2472_v45  ;;  %v645_v51 = vsel %vm123_vm2, %v239_v20, %v2471_v46  ;;  %v2503_v22 = vld [vmem:[%s3216_s5 + $0x8] sm:$0xff]   ;;  %v2506_v46 = vld [vmem:[%s3217_s7 + $0x10] sm:$0xff]  }
 0x4f8   :  { %v2505_v45 = vld [vmem:[%s3217_s7 + $0x8] sm:$0xff]  }
 0x4fc   :  { %v2475_v44 = vpop.permute.xlu0 %2474 }
 0x4fd   :  { %v2477_v47 = vunpack.i.h.bf16 %v2475_v44  ;;  %v2476_v48 = vunpack.i.l.bf16 %v2475_v44  ;;  %v2504_v44 = vld [vmem:[%s3217_s7] sm:$0xff]  }
 0x4ff   :  { %v647_v54 = vsel %vm175_vm3, %v645_v51, %v2476_v48  ;;  %v648_v55 = vsel %vm175_vm3, %v646_v50, %v2477_v47  ;;  %v2507_v47 = vld [vmem:[%s3217_s7 + $0x18] sm:$0xff]   ;;  %v2508_v48 = vld [vmem:[%s3217_s7 + $0x20] sm:$0xff]   ;;  %v2510_v50 = vld [vmem:[%s3217_s7 + $0x30] sm:$0xff]  }
 0x500   :  { %v2511_v51 = vld [vmem:[%s3217_s7 + $0x38] sm:$0xff]  }
 0x504   :  { %v2480_v49 = vpop.permute.xlu1 %2479 }
 0x505   :  { %v2482_v52 = vunpack.i.h.bf16 %v2480_v49  ;;  %v2481_v53 = vunpack.i.l.bf16 %v2480_v49  ;;  %v2509_v49 = vld [vmem:[%s3217_s7 + $0x28] sm:$0xff]  }
 0x507   :  { %v650_v56 = vsel %vm649_vm4, %v647_v54, %v2481_v53  ;;  %v651_v57 = vsel %vm649_vm4, %v648_v55, %v2482_v52  ;;  %v2100_v52 = vld [vmem:[%s3218_s6] ss:$0 sm:$0xff] }
 0x508   :  { %v656_v58 = vpack.c.bf16 %v651_v57, %v650_v56 }
 0x50a   :  { %2313 = vmatmul.mubr.msk.bf16.vlgmr.msra.gmra.mrb[20].mxu1 %vm74_vm1, %v656_v58 }
 0x50b   :  { %2340 = vmatprep.mubr.msk.bf16.mxu1 %vm2625_vm0, %v2624_v0  ;;  %2325 = vmatpush3.bf16.msra.mxu1 %v2504_v44 }
 0x50c   :  { %2326 = vmatprep.subr.bf16.mxu1 %v2624_v0 }
 0x50f   :  { %2327 = vmatpush3.bf16.msra.mxu1 %v2505_v45  ;;  %v2513_v45 = vld [vmem:[%s3210_s2 + $0x18] sm:$0xff]  }
 0x510   :  { %2328 = vmatprep.subr.bf16.mxu1 %v2624_v0 }
 0x513   :  { %2329 = vmatpush3.bf16.msra.mxu1 %v2506_v46 }
 0x514   :  { %2330 = vmatprep.subr.bf16.mxu1 %v2624_v0 }
 0x517   :  { %2331 = vmatpush3.bf16.msra.mxu1 %v2507_v47 }
 0x518   :  { %2332 = vmatprep.subr.bf16.mxu1 %v2624_v0 }
 0x51b   :  { %2333 = vmatpush3.bf16.msra.mxu1 %v2508_v48 }
 0x51c   :  { %2334 = vmatprep.subr.bf16.mxu1 %v2624_v0 }
 0x51f   :  { %2335 = vmatpush3.bf16.msra.mxu1 %v2509_v49 }
 0x520   :  { %2336 = vmatprep.subr.bf16.mxu1 %v2624_v0 }
 0x523   :  { %2337 = vmatpush3.bf16.msra.mxu1 %v2510_v50 }
 0x524   :  { %2338 = vmatprep.subr.bf16.mxu1 %v2624_v0 }
 0x527   :  { %2339 = vmatpush3.bf16.msra.mxu1 %v2511_v51 }
 0x528   :  { %2370 = vmatprep.subr.bf16.mxu1 %v2624_v0 }
 0x5dd   :  { %v710_v63 = vpop.f32.mrb[20].mxu1 }
 0x5de   :  { %v711_v1 = vadd.f32 %v710_v63, %v660_v62  ;;  %v2314_v2 = vpop.f32.mrb[21].mxu1 }
 0x5df   :  { %v713_v5 = vpop.f32.mrb[22].mxu1 }
 0x5e0   :  { %v714_v6 = vadd.f32 %v713_v5, %v660_v62  ;;  %v2315_v7 = vpop.f32.mrb[23].mxu1  ;;  %v717_v8 = vadd.f32 %v711_v1, %v2725_v3 }
 0x5e2   :  { %v719_v9 = vsel %vm74_vm1, %v717_v8, 0.0  ;;  %v718_v10 = vadd.f32 %v714_v6, %v2730_v4  ;;  %v2502_v4 = vld [vmem:[%s3216_s5] sm:$0xff]  }
 0x5e3   :  { %720 = vadd.xlane.f32.xlu0 %v719_v9  ;;  %2317 = vmatpush3.bf16.msra.mxu0 %v2502_v4 }
 0x5e4   :  { %v722_v11 = vsel %vm74_vm1, %v718_v10, 0.0  ;;  %2318 = vmatprep.subr.bf16.mxu0 %v2624_v0 }
 0x5e5   :  { %723 = vadd.xlane.f32.xlu1 %v722_v11 }
 0x5e7   :  { %2319 = vmatpush3.bf16.msra.mxu0 %v2503_v22 }
 0x5e8   :  { %2344 = vmatprep.subr.bf16.mxu0 %v2624_v0 }
 0x670   :  { %v721_v12 = vpop.xlane.xlu0 %720 }
 0x671   :  { %v726_v14 = vmul.f32 0.03125, %v721_v12 }
 0x672   :  { %v724_v15 = vpop.xlane.xlu1 %723 }
 0x673   :  { %v728_v16 = vsub.f32 %v717_v8, %v726_v14  ;;  %v727_v17 = vmul.f32 0.03125, %v724_v15 }
 0x675   :  { %v729_v18 = vsub.f32 %v718_v10, %v727_v17  ;;  %v730_v19 = vmul.f32 %v728_v16, %v728_v16 }
 0x677   :  { %v732_v20 = vsel %vm74_vm1, %v730_v19, 0.0  ;;  %v731_v21 = vmul.f32 %v729_v18, %v729_v18 }
 0x678   :  { %733 = vadd.xlane.f32.xlu0 %v732_v20  ;;  %v863_v20 = vsub.s32 3, %v2865_v59 }
 0x679   :  { %v735_v3 = vsel %vm74_vm1, %v731_v21, 0.0 }
 0x67a   :  { %v864_v21 = vrot.slane %v2871_v61, %v863_v20 }
 0x67c   :  { %736 = vadd.xlane.f32.xlu0 %v735_v3 }
 0x705   :  { %v734_v23 = vpop.xlane.xlu0 %733 }
 0x706   :  { %v738_v24 = vmul.f32 0.03125, %v734_v23 }
 0x708   :  { %v740_v25 = vadd.f32 1e-12, %v738_v24 }
 0x709   :  { %v737_v27 = vpop.xlane.xlu0 %736 }
 0x70a   :  { %2562 = vrsqrt.f32 %v740_v25  ;;  %v739_v28 = vmul.f32 0.03125, %v737_v27 }
 0x70c   :  { %v741_v29 = vadd.f32 1e-12, %v739_v28 }
 0x70e   :  { %2564 = vrsqrt.f32 %v741_v29 }
 0x714   :  { %v2563_v32 = vpop.eup %2562 }
 0x715   :  { %v744_v34 = vmul.f32 %v2563_v32, %v728_v16 }
 0x717   :  { %v750_v37 = vmul.f32 %v749_v33, %v744_v34 }
 0x718   :  { %v2565_v36 = vpop.eup %2564 }
 0x719   :  { %v745_v38 = vmul.f32 %v2565_v36, %v729_v18  ;;  %v2898_v41 = vadd.f32 %v755_v39, %v750_v37 }
 0x71b   :  { %v751_v40 = vmul.f32 %v749_v33, %v745_v38 }
 0x71d   :  { %v2900_v42 = vadd.f32 %v755_v39, %v751_v40 }
 0x71f   :  { %v762_v43 = vpack.c.bf16 %v2900_v42, %v2898_v41 }
 0x721   :  { %2321 = vmatmul.mubr.msk.bf16.vlgmr.msra.gmra.mrb[16].mxu0 %vm74_vm1, %v762_v43 }
 0x722   :  { %2348 = vmatprep.mubr.msk.bf16.mxu0 %vm2625_vm0, %v2624_v0 }
 0x7f4   :  { %v819_v53 = vpop.f32.mrb[16].mxu0 }
 0x7f5   :  { %v820_v54 = vadd.f32 %v2100_v52, %v819_v53  ;;  %v2322_v55 = vpop.f32.mrb[17].mxu0 }
 0x7f6   :  { %v822_v56 = vpop.f32.mrb[18].mxu0 }
 0x7f7   :  { %v828_v57 = vmul.f32 0.044715, %v820_v54  ;;  %v823_v58 = vadd.f32 %v2100_v52, %v822_v56  ;;  %v2323_v13 = vpop.f32.mrb[19].mxu0  ;;  %v826_v14 = vmul.f32 0.5, %v820_v54  ;;  %v984_v52 = vsub.s32 4, %v2865_v59 }
 0x7f9   :  { %v830_v62 = vmul.f32 %v828_v57, %v820_v54  ;;  %v829_v63 = vmul.f32 0.044715, %v823_v58  ;;  %v827_v15 = vmul.f32 0.5, %v823_v58  ;;  %v985_v53 = vrot.slane %v2871_v61, %v984_v52 }
 0x7fb   :  { %v832_v1 = vmul.f32 %v830_v62, %v820_v54  ;;  %v831_v2 = vmul.f32 %v829_v63, %v823_v58 }
 0x7fd   :  { %v834_v5 = vadd.f32 %v832_v1, %v820_v54  ;;  %v833_v6 = vmul.f32 %v831_v2, %v823_v58  ;;  %v990_v54 = vsub.s32 5, %v2865_v59  ;;  %v2529_v59 = vld [vmem:[%s3220_s11 + $0x8] sm:$0xff]  }
 0x7ff   :  { %v836_v7 = vmul.f32 0.7978846, %v834_v5  ;;  %v835_v8 = vadd.f32 %v833_v6, %v823_v58  ;;  %v991_v62 = vrot.slane %v2871_v61, %v990_v54  ;;  %v2118_v6 = vld [vmem:[%s3212_s3 + $0x1] ss:$0 sm:$0xff] }
 0x801   :  { %2566 = vtanh.f32 %v836_v7  ;;  %v837_v9 = vmul.f32 0.7978846, %v835_v8 }
 0x803   :  { %2568 = vtanh.f32 %v837_v9 }
 0x80b   :  { %v2567_v10 = vpop.eup %2566 }
 0x80c   :  { %v840_v11 = vadd.f32 1.0, %v2567_v10 }
 0x80d   :  { %v2569_v12 = vpop.eup %2568 }
 0x80e   :  { %v841_v16 = vadd.f32 1.0, %v2569_v12  ;;  %v842_v17 = vmul.f32 %v840_v11, %v826_v14 }
 0x810   :  { %v843_v18 = vmul.f32 %v841_v16, %v827_v15 }
 0x812   :  { %v860_v19 = vpack.c.bf16 %v843_v18, %v842_v17 }
 0x814   :  { %2341 = vmatmul.mubr.bf16.vlgmr.msra.gmra.mrb[24].mxu1 %v860_v19 }
 0x815   :  { %2372 = vmatprep.mubr.msk.bf16.mxu1 %vm2625_vm0, %v2624_v0 }
 0x8e7   :  { %v947_v3 = vpop.f32.mrb[24].mxu1 }
 0x8e8   :  { %v948_v4 = vadd.f32 %v947_v3, %v864_v21  ;;  %v2342_v22 = vpop.f32.mrb[25].mxu1 }
 0x8e9   :  { %v950_v23 = vpop.f32.mrb[26].mxu1 }
 0x8ea   :  { %v951_v24 = vadd.f32 %v950_v23, %v864_v21  ;;  %v2343_v25 = vpop.f32.mrb[27].mxu1  ;;  %v954_v27 = vadd.f32 %v948_v4, %v2898_v41 }
 0x8ec   :  { %v956_v28 = vsel %vm74_vm1, %v954_v27, 0.0  ;;  %v955_v29 = vadd.f32 %v951_v24, %v2900_v42  ;;  %v2512_v42 = vld [vmem:[%s3210_s2 + $0x10] sm:$0xff]  }
 0x8ed   :  { %957 = vadd.xlane.f32.xlu1 %v956_v28  ;;  %2345 = vmatpush3.bf16.msra.mxu0 %v2512_v42 }
 0x8ee   :  { %v959_v32 = vsel %vm74_vm1, %v955_v29, 0.0  ;;  %2346 = vmatprep.subr.bf16.mxu0 %v2624_v0 }
 0x8ef   :  { %960 = vadd.xlane.f32.xlu0 %v959_v32 }
 0x8f1   :  { %2347 = vmatpush3.bf16.msra.mxu0 %v2513_v45 }
 0x8f2   :  { %2352 = vmatprep.subr.bf16.mxu0 %v2624_v0 }
 0x97a   :  { %v958_v33 = vpop.xlane.xlu1 %957 }
 0x97b   :  { %v962_v34 = vmul.f32 0.03125, %v958_v33 }
 0x97c   :  { %v961_v36 = vpop.xlane.xlu0 %960 }
 0x97d   :  { %v964_v37 = vsub.f32 %v954_v27, %v962_v34  ;;  %v963_v38 = vmul.f32 0.03125, %v961_v36 }
 0x97f   :  { %v965_v39 = vsub.f32 %v955_v29, %v963_v38  ;;  %v966_v40 = vmul.f32 %v964_v37, %v964_v37 }
 0x981   :  { %v968_v43 = vsel %vm74_vm1, %v966_v40, 0.0  ;;  %v967_v44 = vmul.f32 %v965_v39, %v965_v39 }
 0x982   :  { %969 = vadd.xlane.f32.xlu1 %v968_v43 }
 0x983   :  { %v971_v41 = vsel %vm74_vm1, %v967_v44, 0.0 }
 0x984   :  { %972 = vadd.xlane.f32.xlu0 %v971_v41 }
 0xa0f   :  { %v970_v46 = vpop.xlane.xlu1 %969 }
 0xa10   :  { %v974_v47 = vmul.f32 0.03125, %v970_v46 }
 0xa11   :  { %v973_v48 = vpop.xlane.xlu0 %972 }
 0xa12   :  { %v976_v49 = vadd.f32 1e-12, %v974_v47  ;;  %v975_v50 = vmul.f32 0.03125, %v973_v48 }
 0xa14   :  { %2570 = vrsqrt.f32 %v976_v49  ;;  %v977_v51 = vadd.f32 1e-12, %v975_v50 }
 0xa16   :  { %2572 = vrsqrt.f32 %v977_v51 }
 0xa1e   :  { %v2571_v55 = vpop.eup %2570 }
 0xa1f   :  { %v980_v56 = vmul.f32 %v2571_v55, %v964_v37 }
 0xa20   :  { %v2573_v57 = vpop.eup %2572 }
 0xa21   :  { %v986_v58 = vmul.f32 %v985_v53, %v980_v56  ;;  %v981_v13 = vmul.f32 %v2573_v57, %v965_v39 }
 0xa23   :  { %v987_v63 = vmul.f32 %v985_v53, %v981_v13  ;;  %v2970_v1 = vadd.f32 %v991_v62, %v986_v58 }
 0xa25   :  { %v2972_v2 = vadd.f32 %v991_v62, %v987_v63 }
 0xa27   :  { %v1001_v5 = vpack.c.bf16 %v2972_v2, %v2970_v1 }
 0xa29   :  { %2349 = vmatmul.mubr.msk.bf16.vlgmr.msra.gmra.mrb[20].mxu0 %vm74_vm1, %v1001_v5 }
 0xa2a   :  { %2354 = vmatprep.mubr.msk.bf16.mxu0 %vm2625_vm0, %v2624_v0 }
 0xafc   :  { %v1059_v7 = vpop.f32.mrb[20].mxu0 }
 0xafd   :  { %v2350_v8 = vpop.f32.mrb[21].mxu0  ;;  %v1060_v9 = vadd.f32 %v2118_v6, %v1059_v7 }
 0xafe   :  { %v1062_v61 = vpop.f32.mrb[22].mxu0 }
 0xaff   :  { %v1063_v10 = vadd.f32 %v2118_v6, %v1062_v61  ;;  %v2351_v11 = vpop.f32.mrb[23].mxu0  ;;  %v2622_v61 = vld [vmem:[%s3213_s1] sm:$0xff] }
 0xb00   :  { %v2623_v11 = vld [vmem:[%s3213_s1 + $0x8] sm:$0xff]  ;;  %s3228_s1 = smov 48  }
 0xb01   :  { %v2982_v12 = vpack.c.bf16 %v1063_v10, %v1060_v9 }
 0xb03   :  { %1068 = vrot.lane.b32.xlu1 %v2982_v12, %s2627_s18 }
 0xb07   :  { %1144 = vrot.lane.b32.xlu1 %v2982_v12, %s2634_s29  ;;  %s3230_s29 = smov 16  }
 0xb0b   :  { %1191 = vrot.lane.b32.xlu1 %v2982_v12, %s2626_s0 }
 0xb0f   :  { %1318 = vrot.lane.b32.xlu1 %v2982_v12, %s2628_s19 }
 0xb13   :  { %1316 = vrot.lane.b32.xlu1 %v2982_v12, %s2631_s22  ;;  %s3229_s22 = smov 8  }
 0xb17   :  { %1443 = vrot.lane.b32.xlu1 %v2982_v12, %s2630_s21 }
 0xb1b   :  { %1441 = vrot.lane.b32.xlu1 %v2982_v12, %s2632_s23 }
 0xb75   :  { %v1069_v14 = vpop.permute.xlu1 %1068 }
 0xb76   :  { %v1074_v15 = vsel %vm123_vm2, %v1069_v14, 0 }
 0xb77   :  { %2353 = vmatpush3.bf16.xpose.msra.mxu0 %v1074_v15 }
 0xb78   :  { %2358 = vmatprep.subr.bf16.mxu0 %v2624_v0 }
 0xb79   :  { %v1145_v16 = vpop.permute.xlu1 %1144 }
 0xb7d   :  { %v1192_v44 = vpop.permute.xlu1 %1191 }
 0xb7e   :  { %2355 = vmatmul.mubr.msk.bf16.vlgmr.msra.gmra.mrb[24].mxu0 %vm123_vm2, %v2982_v12 }
 0xb7f   :  { %2359 = vmatpush3.bf16.msra.mxu0 %v1145_v16  ;;  %2360 = vmatprep.mubr.msk.bf16.mxu0 %vm2625_vm0, %v2624_v0 }
 0xb80   :  { %2364 = vmatprep.subr.bf16.mxu0 %v2624_v0 }
 0xb81   :  { %v1319_v48 = vpop.permute.xlu1 %1318 }
 0xb82   :  { %v1324_v50 = vsel %vm123_vm2, %v1319_v48, 0 }
 0xb85   :  { %v1317_v49 = vpop.permute.xlu1 %1316 }
 0xb89   :  { %v1444_v51 = vpop.permute.xlu1 %1443 }
 0xb8a   :  { %v1449_v53 = vsel %vm123_vm2, %v1444_v51, 0 }
 0xb8d   :  { %v1442_v55 = vpop.permute.xlu1 %1441 }
 0xc51   :  { %v1110_v17 = vpop.f32.mrb[24].mxu0 }
 0xc52   :  { %v1117_v18 = vmul.f32 0.35355338, %v1110_v17  ;;  %v2356_v19 = vpop.f32.mrb[25].mxu0 }
 0xc53   :  { %v1113_v21 = vpop.f32.mrb[26].mxu0 }
 0xc54   :  { %v1118_v3 = vmul.f32 0.35355338, %v1113_v21  ;;  %v2357_v4 = vpop.f32.mrb[27].mxu0  ;;  %v1119_v22 = vadd.f32 %v1117_v18, %v2782_v26 }
 0xc56   :  { %v1121_v23 = vsel %vm175_vm3, %v1119_v22, -inf  ;;  %v1120_v24 = vadd.f32 %v1118_v3, %v2787_v30 }
 0xc57   :  { %1122 = vmax.xlane.f32.xlu0 %v1121_v23 }
 0xc58   :  { %v1124_v25 = vsel %vm175_vm3, %v1120_v24, -inf }
 0xc5b   :  { %1125 = vmax.xlane.f32.xlu0 %v1124_v25 }
 0xce4   :  { %v1123_v27 = vpop.xlane.xlu0 %1122 }
 0xce5   :  { %v1127_v28 = vsub.f32 %v1119_v22, %v1123_v27 }
 0xce7   :  { %v1129_v29 = vmul.f32 1.442695, %v1127_v28 }
 0xce8   :  { %v1126_v32 = vpop.xlane.xlu0 %1125 }
 0xce9   :  { %2574 = vpow2.f32 %v1129_v29  ;;  %v1128_v33 = vsub.f32 %v1120_v24, %v1126_v32 }
 0xceb   :  { %v1131_v34 = vmul.f32 1.442695, %v1128_v33 }
 0xced   :  { %2576 = vpow2.f32 %v1131_v34 }
 0xcf3   :  { %v2575_v36 = vpop.eup %2574 }
 0xcf4   :  { %v1133_v37 = vsel %vm175_vm3, %v2575_v36, 0.0 }
 0xcf5   :  { %1134 = vadd.xlane.f32.xlu0 %v1133_v37 }
 0xcf7   :  { %v2577_v26 = vpop.eup %2576 }
 0xcf8   :  { %v1136_v38 = vsel %vm175_vm3, %v2577_v26, 0.0 }
 0xcf9   :  { %1137 = vadd.xlane.f32.xlu0 %v1136_v38 }
 0xd0f   :  { %1193 = vrot.lane.b32.xlu0 %v2982_v12, %s2629_s20 }
 0xd82   :  { %v1135_v30 = vpop.xlane.xlu0 %1134 }
 0xd83   :  { %2578 = vrcp.f32 %v1135_v30 }
 0xd86   :  { %v1138_v39 = vpop.xlane.xlu0 %1137 }
 0xd87   :  { %2580 = vrcp.f32 %v1138_v39 }
 0xd8a   :  { %v1194_v45 = vpop.permute.xlu0 %1193 }
 0xd8b   :  { %v1199_v47 = vsel %vm123_vm2, %v1194_v45, 0 }
 0xd8d   :  { %v2579_v40 = vpop.eup %2578 }
 0xd8e   :  { %v1141_v41 = vmul.f32 %v2579_v40, %v2575_v36 }
 0xd91   :  { %v2581_v43 = vpop.eup %2580 }
 0xd92   :  { %v1142_v42 = vmul.f32 %v2581_v43, %v2577_v26 }
 0xd94   :  { %v1143_v46 = vpack.c.bf16 %v1142_v42, %v1141_v41 }
 0xd96   :  { %2361 = vmatmul.mubr.msk.bf16.vlgmr.msra.gmra.mrb[28].mxu0 %vm175_vm3, %v1143_v46 }
 0xd97   :  { %2365 = vmatpush3.bf16.xpose.msra.mxu0 %v1199_v47  ;;  %2366 = vmatprep.mubr.msk.bf16.mxu0 %vm2625_vm0, %v2624_v0 }
 0xd98   :  { %2376 = vmatprep.subr.bf16.mxu0 %v2624_v0 }
 0xd9e   :  { %2367 = vmatmul.mubr.msk.bf16.vlgmr.msra.gmra.mrb[32].mxu0 %vm123_vm2, %v1192_v44 }
 0xd9f   :  { %2377 = vmatpush3.bf16.xpose.msra.mxu0 %v1324_v50  ;;  %2378 = vmatprep.mubr.msk.bf16.mxu0 %vm2625_vm0, %v2624_v0 }
 0xda0   :  { %2388 = vmatprep.subr.bf16.mxu0 %v2624_v0 }
 0xda6   :  { %2379 = vmatmul.mubr.msk.bf16.vlgmr.msra.gmra.mrb[36].mxu0 %vm123_vm2, %v1317_v49 }
 0xda7   :  { %2389 = vmatpush3.bf16.xpose.msra.mxu0 %v1449_v53  ;;  %2390 = vmatprep.mubr.msk.bf16.mxu0 %vm2625_vm0, %v2624_v0 }
 0xda8   :  { %2400 = vmatprep.subr.bf16.mxu0 %v2624_v0 }
 0xdae   :  { %2391 = vmatmul.mubr.msk.bf16.vlgmr.msra.gmra.mrb[40].mxu0 %vm123_vm2, %v1442_v55 }
 0xdaf   :  { %2404 = vmatprep.mubr.msk.bf16.mxu0 %vm2625_vm0, %v2624_v0 }
 0xe69   :  { %v3031_v56 = vpop.f32.mrb[28].mxu0 }
 0xe6a   :  { %v2362_v57 = vpop.f32.mrb[29].mxu0 }
 0xe6b   :  { %v3033_v58 = vpop.f32.mrb[30].mxu0 }
 0xe6c   :  { %v2363_v13 = vpop.f32.mrb[31].mxu0 }
 0xe71   :  { %v1235_v62 = vpop.f32.mrb[32].mxu0 }
 0xe72   :  { %v1242_v63 = vmul.f32 0.35355338, %v1235_v62  ;;  %v2368_v5 = vpop.f32.mrb[33].mxu0 }
 0xe73   :  { %v1238_v6 = vpop.f32.mrb[34].mxu0 }
 0xe74   :  { %v1243_v7 = vmul.f32 0.35355338, %v1238_v6  ;;  %v2369_v8 = vpop.f32.mrb[35].mxu0  ;;  %v1244_v9 = vadd.f32 %v2622_v61, %v1242_v63 }
 0xe76   :  { %v1246_v10 = vsel %vm175_vm3, %v1244_v9, -inf  ;;  %v1245_v14 = vadd.f32 %v2623_v11, %v1243_v7 }
 0xe77   :  { %1247 = vmax.xlane.f32.xlu0 %v1246_v10 }
 0xe78   :  { %v1249_v15 = vsel %vm175_vm3, %v1245_v14, -inf }
 0xe79   :  { %1250 = vmax.xlane.f32.xlu1 %v1249_v15  ;;  %v1360_v16 = vpop.f32.mrb[36].mxu0 }
 0xe7a   :  { %v1367_v17 = vmul.f32 0.35355338, %v1360_v16  ;;  %v2380_v18 = vpop.f32.mrb[37].mxu0 }
 0xe7b   :  { %v1363_v19 = vpop.f32.mrb[38].mxu0 }
 0xe7c   :  { %v1368_v21 = vmul.f32 0.35355338, %v1363_v19  ;;  %v2381_v3 = vpop.f32.mrb[39].mxu0  ;;  %v1369_v4 = vadd.f32 %v2622_v61, %v1367_v17 }
 0xe7e   :  { %v1371_v22 = vsel %vm175_vm3, %v1369_v4, -inf  ;;  %v1370_v23 = vadd.f32 %v2623_v11, %v1368_v21 }
 0xe7f   :  { %1372 = vmax.xlane.f32.xlu0 %v1371_v22 }
 0xe80   :  { %v1374_v28 = vsel %vm175_vm3, %v1370_v23, -inf }
 0xe81   :  { %v1485_v24 = vpop.f32.mrb[40].mxu0 }
 0xe82   :  { %v1492_v25 = vmul.f32 0.35355338, %v1485_v24  ;;  %v2392_v27 = vpop.f32.mrb[41].mxu0 }
 0xe83   :  { %1375 = vmax.xlane.f32.xlu0 %v1374_v28  ;;  %v1488_v29 = vpop.f32.mrb[42].mxu0 }
 0xe84   :  { %v1493_v32 = vmul.f32 0.35355338, %v1488_v29  ;;  %v2393_v33 = vpop.f32.mrb[43].mxu0  ;;  %v1494_v34 = vadd.f32 %v2622_v61, %v1492_v25 }
 0xe86   :  { %v1496_v36 = vsel %vm175_vm3, %v1494_v34, -inf  ;;  %v1495_v37 = vadd.f32 %v2623_v11, %v1493_v32 }
 0xe87   :  { %1497 = vmax.xlane.f32.xlu1 %v1496_v36 }
 0xe88   :  { %v1499_v26 = vsel %vm175_vm3, %v1495_v37, -inf }
 0xe89   :  { %1500 = vmax.xlane.f32.xlu0 %v1499_v26 }
 0xe98   :  { %1269 = vrot.lane.b32.xlu1 %v2982_v12, %s2633_s28 }
 0xf04   :  { %v1248_v38 = vpop.xlane.xlu0 %1247 }
 0xf05   :  { %v1252_v30 = vsub.f32 %v1244_v9, %v1248_v38 }
 0xf06   :  { %v1251_v39 = vpop.xlane.xlu1 %1250 }
 0xf07   :  { %v1254_v40 = vmul.f32 1.442695, %v1252_v30  ;;  %v1253_v43 = vsub.f32 %v1245_v14, %v1251_v39 }
 0xf09   :  { %2582 = vpow2.f32 %v1254_v40  ;;  %v1256_v44 = vmul.f32 1.442695, %v1253_v43 }
 0xf0b   :  { %2584 = vpow2.f32 %v1256_v44 }
 0xf0c   :  { %v1373_v41 = vpop.xlane.xlu0 %1372 }
 0xf0d   :  { %v1377_v42 = vsub.f32 %v1369_v4, %v1373_v41 }
 0xf0f   :  { %v1379_v45 = vmul.f32 1.442695, %v1377_v42  ;;  %v2514_v42 = vld [vmem:[%s3214_s4 + $0x10] sm:$0xff]  }
 0xf10   :  { %v1376_v46 = vpop.xlane.xlu0 %1375  ;;  %2401 = vmatpush3.bf16.msra.mxu0 %v2514_v42 }
 0xf11   :  { %2586 = vpow2.f32 %v1379_v45  ;;  %v1378_v47 = vsub.f32 %v1370_v23, %v1376_v46  ;;  %2402 = vmatprep.subr.bf16.mxu0 %v2624_v0 }
 0xf13   :  { %v2583_v48 = vpop.eup %2582  ;;  %v1381_v49 = vmul.f32 1.442695, %v1378_v47  ;;  %v2515_v47 = vld [vmem:[%s3214_s4 + $0x18] sm:$0xff]  }
 0xf14   :  { %v1498_v50 = vpop.xlane.xlu1 %1497  ;;  %v1258_v51 = vsel %vm175_vm3, %v2583_v48, 0.0  ;;  %2403 = vmatpush3.bf16.msra.mxu0 %v2515_v47 }
 0xf15   :  { %v2585_v53 = vpop.eup %2584  ;;  %2588 = vpow2.f32 %v1381_v49  ;;  %v1502_v55 = vsub.f32 %v1494_v34, %v1498_v50  ;;  %1259 = vadd.xlane.f32.xlu1 %v1258_v51  ;;  %2416 = vmatprep.subr.bf16.mxu0 %v2624_v0 }
 0xf16   :  { %v1501_v57 = vpop.xlane.xlu0 %1500  ;;  %v1261_v13 = vsel %vm175_vm3, %v2585_v53, 0.0 }
 0xf17   :  { %v1504_v62 = vmul.f32 1.442695, %v1502_v55  ;;  %v1503_v63 = vsub.f32 %v1495_v37, %v1501_v57  ;;  %1262 = vadd.xlane.f32.xlu0 %v1261_v13 }
 0xf18   :  { %v1270_v5 = vpop.permute.xlu1 %1269 }
 0xf19   :  { %2590 = vpow2.f32 %v1504_v62  ;;  %v1506_v6 = vmul.f32 1.442695, %v1503_v63  ;;  %2371 = vmatpush3.bf16.msra.mxu1 %v1270_v5 }
 0xf1a   :  { %2382 = vmatprep.subr.bf16.mxu1 %v2624_v0 }
 0xf1b   :  { %v2587_v7 = vpop.eup %2586  ;;  %2592 = vpow2.f32 %v1506_v6 }
 0xf1c   :  { %v1383_v8 = vsel %vm175_vm3, %v2587_v7, 0.0 }
 0xf1d   :  { %1384 = vadd.xlane.f32.xlu1 %v1383_v8 }
 0xf1f   :  { %v2589_v61 = vpop.eup %2588 }
 0xf20   :  { %v1386_v9 = vsel %vm175_vm3, %v2589_v61, 0.0 }
 0xf21   :  { %1387 = vadd.xlane.f32.xlu0 %v1386_v9 }
 0xf23   :  { %v2591_v10 = vpop.eup %2590 }
 0xf24   :  { %v1508_v11 = vsel %vm175_vm3, %v2591_v10, 0.0 }
 0xf25   :  { %v2593_v14 = vpop.eup %2592  ;;  %1509 = vadd.xlane.f32.xlu1 %v1508_v11 }
 0xf26   :  { %v1511_v15 = vsel %vm175_vm3, %v2593_v14, 0.0 }
 0xf27   :  { %1512 = vadd.xlane.f32.xlu0 %v1511_v15 }
 0xf36   :  { %1519 = vrot.lane.b32.xlu1 %v2982_v12, %s2636_s14  ;;  %s3231_s14 = smov 24  }
 0xf3d   :  { %1394 = vrot.lane.b32.xlu0 %v2982_v12, %s3228_s1 }
 0xfa2   :  { %v1260_v16 = vpop.xlane.xlu1 %1259 }
 0xfa3   :  { %2594 = vrcp.f32 %v1260_v16 }
 0xfa4   :  { %v1263_v17 = vpop.xlane.xlu0 %1262 }
 0xfa5   :  { %2596 = vrcp.f32 %v1263_v17 }
 0xfaa   :  { %v1385_v18 = vpop.xlane.xlu1 %1384 }
 0xfab   :  { %2598 = vrcp.f32 %v1385_v18 }
 0xfad   :  { %v2595_v19 = vpop.eup %2594 }
 0xfae   :  { %v1388_v21 = vpop.xlane.xlu0 %1387  ;;  %v1266_v4 = vmul.f32 %v2595_v19, %v2583_v48 }
 0xfaf   :  { %v2597_v3 = vpop.eup %2596  ;;  %2600 = vrcp.f32 %v1388_v21 }
 0xfb0   :  { %v1267_v22 = vmul.f32 %v2597_v3, %v2585_v53 }
 0xfb2   :  { %v1510_v23 = vpop.xlane.xlu1 %1509  ;;  %v1268_v24 = vpack.c.bf16 %v1267_v22, %v1266_v4 }
 0xfb3   :  { %2602 = vrcp.f32 %v1510_v23 }
 0xfb4   :  { %2373 = vmatmul.mubr.msk.bf16.vlgmr.msra.gmra.mrb[28].mxu1 %vm175_vm3, %v1268_v24  ;;  %v1513_v25 = vpop.xlane.xlu0 %1512 }
 0xfb5   :  { %2604 = vrcp.f32 %v1513_v25  ;;  %2384 = vmatprep.mubr.msk.bf16.mxu1 %vm2625_vm0, %v2624_v0  ;;  %v2599_v12 = vpop.eup %2598 }
 0xfb6   :  { %v1391_v29 = vmul.f32 %v2599_v12, %v2587_v7  ;;  %v1520_v36 = vpop.permute.xlu1 %1519 }
 0xfb8   :  { %v1395_v27 = vpop.permute.xlu0 %1394 }
 0xfb9   :  { %v2601_v28 = vpop.eup %2600  ;;  %2383 = vmatpush3.bf16.msra.mxu1 %v1395_v27 }
 0xfba   :  { %v1392_v32 = vmul.f32 %v2601_v28, %v2589_v61  ;;  %2394 = vmatprep.subr.bf16.mxu1 %v2624_v0 }
 0xfbc   :  { %v1393_v33 = vpack.c.bf16 %v1392_v32, %v1391_v29 }
 0xfbd   :  { %v2603_v34 = vpop.eup %2602 }
 0xfbe   :  { %2385 = vmatmul.mubr.msk.bf16.vlgmr.msra.gmra.mrb[32].mxu1 %vm175_vm3, %v1393_v33  ;;  %v1516_v38 = vmul.f32 %v2603_v34, %v2591_v10 }
 0xfbf   :  { %v2605_v37 = vpop.eup %2604  ;;  %2395 = vmatpush3.bf16.msra.mxu1 %v1520_v36  ;;  %2396 = vmatprep.mubr.msk.bf16.mxu1 %vm2625_vm0, %v2624_v0 }
 0xfc0   :  { %v1517_v26 = vmul.f32 %v2605_v37, %v2593_v14  ;;  %2408 = vmatprep.subr.bf16.mxu1 %v2624_v0 }
 0xfc2   :  { %v1518_v30 = vpack.c.bf16 %v1517_v26, %v1516_v38 }
 0xfc6   :  { %2397 = vmatmul.mubr.msk.bf16.vlgmr.msra.gmra.mrb[36].mxu1 %vm175_vm3, %v1518_v30  ;;  %v2517_v30 = vld [vmem:[%s3216_s5 + $0x18] sm:$0xff]  }
 0xfc7   :  { %2412 = vmatprep.mubr.msk.bf16.mxu1 %vm2625_vm0, %v2624_v0 }
0x1087   :  { %v1309_v39 = vpop.f32.mrb[28].mxu1 }
0x1088   :  { %v2374_v40 = vpop.f32.mrb[29].mxu1 }
0x1089   :  { %v1312_v43 = vpop.f32.mrb[30].mxu1 }
0x108a   :  { %v2483_v44 = vpack.i.bf16 %v1312_v43, %v1309_v39  ;;  %v2375_v41 = vpop.f32.mrb[31].mxu1 }
0x108c   :  { %2484 = vrot.lane.b32.xlu1 %v2483_v44, %s3229_s22 }
0x1091   :  { %v1434_v45 = vpop.f32.mrb[32].mxu1 }
0x1092   :  { %v2386_v46 = vpop.f32.mrb[33].mxu1 }
0x1093   :  { %v1437_v48 = vpop.f32.mrb[34].mxu1 }
0x1094   :  { %v2488_v49 = vpack.i.bf16 %v1437_v48, %v1434_v45  ;;  %v2387_v50 = vpop.f32.mrb[35].mxu1 }
0x1096   :  { %2489 = vrot.lane.b32.xlu0 %v2488_v49, %s3230_s29 }
0x1099   :  { %v1559_v51 = vpop.f32.mrb[36].mxu1 }
0x109a   :  { %v2398_v53 = vpop.f32.mrb[37].mxu1 }
0x109b   :  { %v1562_v55 = vpop.f32.mrb[38].mxu1 }
0x109c   :  { %v2493_v57 = vpack.i.bf16 %v1562_v55, %v1559_v51  ;;  %v2399_v13 = vpop.f32.mrb[39].mxu1 }
0x109e   :  { %2494 = vrot.lane.b32.xlu1 %v2493_v57, %s3231_s14 }
0x10fe   :  { %v2485_v62 = vpop.permute.xlu1 %2484 }
0x10ff   :  { %v2487_v5 = vunpack.i.h.bf16 %v2485_v62  ;;  %v2486_v6 = vunpack.i.l.bf16 %v2485_v62  ;;  %v2520_v62 = vld [vmem:[%s3217_s7 + $0x50] sm:$0xff]  }
0x1101   :  { %v1591_v9 = vsel %vm123_vm2, %v3033_v58, %v2487_v5  ;;  %v1590_v10 = vsel %vm123_vm2, %v3031_v56, %v2486_v6  ;;  %v3096_v56 = vld [vmem:[%s3215_s8 + $0x8] sm:$0x3f]  ;;  %v2522_v5 = vld [vmem:[%s3217_s7 + $0x60] sm:$0xff]  }
0x1102   :  { %v1605_v58 = vrot.slane %v3096_v56, %v659_v60  ;;  %v1693_v46 = vrot.slane %v3096_v56, %v748_v31  ;;  %v1699_v51 = vrot.slane %v3096_v56, %v754_v35  ;;  %v2518_v31 = vld [vmem:[%s3217_s7 + $0x40] sm:$0xff]   ;;  %v2519_v35 = vld [vmem:[%s3217_s7 + $0x48] sm:$0xff]  }
0x1103   :  { %v2523_v6 = vld [vmem:[%s3217_s7 + $0x68] sm:$0xff]  }
0x1108   :  { %v2490_v63 = vpop.permute.xlu0 %2489 }
0x1109   :  { %v2492_v7 = vunpack.i.h.bf16 %v2490_v63  ;;  %v2491_v8 = vunpack.i.l.bf16 %v2490_v63  ;;  %v2521_v63 = vld [vmem:[%s3217_s7 + $0x58] sm:$0xff]  }
0x110b   :  { %v1593_v15 = vsel %vm175_vm3, %v1591_v9, %v2492_v7  ;;  %v1592_v16 = vsel %vm175_vm3, %v1590_v10, %v2491_v8  ;;  %v2524_v7 = vld [vmem:[%s3217_s7 + $0x70] sm:$0xff]   ;;  %v2525_v8 = vld [vmem:[%s3217_s7 + $0x78] sm:$0xff]  }
0x1110   :  { %v2495_v61 = vpop.permute.xlu1 %2494 }
0x1111   :  { %v2497_v11 = vunpack.i.h.bf16 %v2495_v61  ;;  %v2496_v14 = vunpack.i.l.bf16 %v2495_v61  ;;  %v2142_v61 = vld [vmem:[%s3218_s6 + $0x1] ss:$0 sm:$0xff] }
0x1113   :  { %v1595_v17 = vsel %vm649_vm4, %v1593_v15, %v2497_v11  ;;  %v1594_v18 = vsel %vm649_vm4, %v1592_v16, %v2496_v14 }
0x1114   :  { %v1601_v19 = vpack.c.bf16 %v1595_v17, %v1594_v18 }
0x1116   :  { %2405 = vmatmul.mubr.msk.bf16.vlgmr.msra.gmra.mrb[44].mxu0 %vm74_vm1, %v1601_v19 }
0x1117   :  { %2432 = vmatprep.mubr.msk.bf16.mxu0 %vm2625_vm0, %v2624_v0  ;;  %2417 = vmatpush3.bf16.msra.mxu0 %v2518_v31 }
0x1118   :  { %2418 = vmatprep.subr.bf16.mxu0 %v2624_v0 }
0x111b   :  { %2419 = vmatpush3.bf16.msra.mxu0 %v2519_v35 }
0x111c   :  { %2420 = vmatprep.subr.bf16.mxu0 %v2624_v0 }
0x111f   :  { %2421 = vmatpush3.bf16.msra.mxu0 %v2520_v62 }
0x1120   :  { %2422 = vmatprep.subr.bf16.mxu0 %v2624_v0 }
0x1123   :  { %2423 = vmatpush3.bf16.msra.mxu0 %v2521_v63 }
0x1124   :  { %2424 = vmatprep.subr.bf16.mxu0 %v2624_v0 }
0x1127   :  { %2425 = vmatpush3.bf16.msra.mxu0 %v2522_v5  ;;  %v1932_v5 = vrot.slane %v3096_v56, %v984_v52  ;;  %v2528_v52 = vld [vmem:[%s3220_s11] sm:$0xff]  }
0x1128   :  { %2426 = vmatprep.subr.bf16.mxu0 %v2624_v0 }
0x112b   :  { %2427 = vmatpush3.bf16.msra.mxu0 %v2523_v6 }
0x112c   :  { %2428 = vmatprep.subr.bf16.mxu0 %v2624_v0 }
0x112f   :  { %2429 = vmatpush3.bf16.msra.mxu0 %v2524_v7 }
0x1130   :  { %2430 = vmatprep.subr.bf16.mxu0 %v2624_v0 }
0x1133   :  { %2431 = vmatpush3.bf16.msra.mxu0 %v2525_v8 }
0x11e9   :  { %v1655_v21 = vpop.f32.mrb[44].mxu0 }
0x11ea   :  { %v1656_v3 = vadd.f32 %v1655_v21, %v1605_v58  ;;  %v2406_v4 = vpop.f32.mrb[45].mxu0 }
0x11eb   :  { %v1658_v22 = vpop.f32.mrb[46].mxu0 }
0x11ec   :  { %v1659_v23 = vadd.f32 %v1658_v22, %v1605_v58  ;;  %v2407_v24 = vpop.f32.mrb[47].mxu0  ;;  %v1662_v25 = vadd.f32 %v1656_v3, %v2970_v1 }
0x11ee   :  { %v1664_v12 = vsel %vm74_vm1, %v1662_v25, 0.0  ;;  %v1663_v27 = vadd.f32 %v1659_v23, %v2972_v2  ;;  %v2516_v2 = vld [vmem:[%s3216_s5 + $0x10] sm:$0xff]  }
0x11ef   :  { %1665 = vadd.xlane.f32.xlu0 %v1664_v12  ;;  %2409 = vmatpush3.bf16.msra.mxu1 %v2516_v2 }
0x11f0   :  { %v1667_v28 = vsel %vm74_vm1, %v1663_v27, 0.0  ;;  %2410 = vmatprep.subr.bf16.mxu1 %v2624_v0 }
0x11f1   :  { %1668 = vadd.xlane.f32.xlu1 %v1667_v28 }
0x11f3   :  { %2411 = vmatpush3.bf16.msra.mxu1 %v2517_v30 }
0x11f4   :  { %2436 = vmatprep.subr.bf16.mxu1 %v2624_v0 }
0x127c   :  { %v1666_v29 = vpop.xlane.xlu0 %1665 }
0x127d   :  { %v1670_v32 = vmul.f32 0.03125, %v1666_v29 }
0x127e   :  { %v1669_v33 = vpop.xlane.xlu1 %1668 }
0x127f   :  { %v1672_v60 = vsub.f32 %v1662_v25, %v1670_v32  ;;  %v1671_v34 = vmul.f32 0.03125, %v1669_v33 }
0x1281   :  { %v1673_v36 = vsub.f32 %v1663_v27, %v1671_v34  ;;  %v1674_v37 = vmul.f32 %v1672_v60, %v1672_v60 }
0x1283   :  { %v1676_v26 = vsel %vm74_vm1, %v1674_v37, 0.0  ;;  %v1675_v38 = vmul.f32 %v1673_v36, %v1673_v36 }
0x1284   :  { %1677 = vadd.xlane.f32.xlu0 %v1676_v26 }
0x1285   :  { %v1679_v1 = vsel %vm74_vm1, %v1675_v38, 0.0 }
0x1288   :  { %1680 = vadd.xlane.f32.xlu0 %v1679_v1 }
0x1311   :  { %v1678_v39 = vpop.xlane.xlu0 %1677 }
0x1312   :  { %v1682_v40 = vmul.f32 0.03125, %v1678_v39 }
0x1314   :  { %v1684_v43 = vadd.f32 1e-12, %v1682_v40 }
0x1315   :  { %v1681_v44 = vpop.xlane.xlu0 %1680 }
0x1316   :  { %2606 = vrsqrt.f32 %v1684_v43  ;;  %v1683_v41 = vmul.f32 0.03125, %v1681_v44 }
0x1318   :  { %v1685_v42 = vadd.f32 1e-12, %v1683_v41 }
0x131a   :  { %2608 = vrsqrt.f32 %v1685_v42 }
0x1320   :  { %v2607_v45 = vpop.eup %2606 }
0x1321   :  { %v1688_v47 = vmul.f32 %v2607_v45, %v1672_v60 }
0x1323   :  { %v1694_v49 = vmul.f32 %v1693_v46, %v1688_v47 }
0x1324   :  { %v2609_v48 = vpop.eup %2608 }
0x1325   :  { %v1689_v50 = vmul.f32 %v2609_v48, %v1673_v36  ;;  %v3121_v55 = vadd.f32 %v1699_v51, %v1694_v49  ;;  %v1811_v36 = vrot.slane %v3096_v56, %v863_v20 }
0x1327   :  { %v1695_v53 = vmul.f32 %v1693_v46, %v1689_v50 }
0x1329   :  { %v3123_v57 = vadd.f32 %v1699_v51, %v1695_v53  ;;  %v2526_v53 = vld [vmem:[%s3219_s9] sm:$0xff]  }
0x132b   :  { %v1707_v13 = vpack.c.bf16 %v3123_v57, %v3121_v55 }
0x132d   :  { %2413 = vmatmul.mubr.msk.bf16.vlgmr.msra.gmra.mrb[40].mxu1 %vm74_vm1, %v1707_v13 }
0x132e   :  { %2440 = vmatprep.mubr.msk.bf16.mxu1 %vm2625_vm0, %v2624_v0  ;;  %2437 = vmatpush3.bf16.msra.mxu1 %v2526_v53 }
0x132f   :  { %2438 = vmatprep.subr.bf16.mxu1 %v2624_v0 }
0x1400   :  { %v1765_v9 = vpop.f32.mrb[40].mxu1 }
0x1401   :  { %v1766_v10 = vadd.f32 %v2142_v61, %v1765_v9  ;;  %v2414_v11 = vpop.f32.mrb[41].mxu1 }
0x1402   :  { %v1768_v14 = vpop.f32.mrb[42].mxu1 }
0x1403   :  { %v1774_v15 = vmul.f32 0.044715, %v1766_v10  ;;  %v1769_v16 = vadd.f32 %v2142_v61, %v1768_v14  ;;  %v2415_v17 = vpop.f32.mrb[43].mxu1  ;;  %v1772_v28 = vmul.f32 0.5, %v1766_v10 }
0x1405   :  { %v1776_v18 = vmul.f32 %v1774_v15, %v1766_v10  ;;  %v1775_v19 = vmul.f32 0.044715, %v1769_v16  ;;  %v1773_v29 = vmul.f32 0.5, %v1769_v16 }
0x1407   :  { %v1778_v58 = vmul.f32 %v1776_v18, %v1766_v10  ;;  %v1777_v21 = vmul.f32 %v1775_v19, %v1769_v16 }
0x1409   :  { %v1780_v3 = vadd.f32 %v1778_v58, %v1766_v10  ;;  %v1779_v4 = vmul.f32 %v1777_v21, %v1769_v16  ;;  %v1938_v10 = vrot.slane %v3096_v56, %v990_v54  ;;  %v2170_v54 = vld [vmem:[%s3221_s10] ss:$0 sm:$0xff] }
0x140b   :  { %v1782_v22 = vmul.f32 0.7978846, %v1780_v3  ;;  %v1781_v23 = vadd.f32 %v1779_v4, %v1769_v16 }
0x140d   :  { %2610 = vtanh.f32 %v1782_v22  ;;  %v1783_v24 = vmul.f32 0.7978846, %v1781_v23 }
0x140f   :  { %2612 = vtanh.f32 %v1783_v24 }
0x1417   :  { %v2611_v25 = vpop.eup %2610 }
0x1418   :  { %v1786_v12 = vadd.f32 1.0, %v2611_v25 }
0x1419   :  { %v2613_v27 = vpop.eup %2612 }
0x141a   :  { %v1787_v32 = vadd.f32 1.0, %v2613_v27  ;;  %v1788_v33 = vmul.f32 %v1786_v12, %v1772_v28 }
0x141c   :  { %v1789_v60 = vmul.f32 %v1787_v32, %v1773_v29 }
0x141e   :  { %v1807_v34 = vpack.c.bf16 %v1789_v60, %v1788_v33 }
0x1420   :  { %2433 = vmatmul.mubr.bf16.vlgmr.msra.gmra.mrb[48].mxu0 %v1807_v34 }
0x14f3   :  { %v1894_v37 = vpop.f32.mrb[48].mxu0 }
0x14f4   :  { %v1895_v26 = vadd.f32 %v1894_v37, %v1811_v36  ;;  %v2434_v38 = vpop.f32.mrb[49].mxu0 }
0x14f5   :  { %v1897_v1 = vpop.f32.mrb[50].mxu0 }
0x14f6   :  { %v1898_v2 = vadd.f32 %v1897_v1, %v1811_v36  ;;  %v2435_v30 = vpop.f32.mrb[51].mxu0  ;;  %v1901_v39 = vadd.f32 %v1895_v26, %v3121_v55  ;;  %v2527_v55 = vld [vmem:[%s3219_s9 + $0x8] sm:$0xff]  }
0x14f7   :  { %2439 = vmatpush3.bf16.msra.mxu1 %v2527_v55 }
0x14f8   :  { %v1903_v40 = vsel %vm74_vm1, %v1901_v39, 0.0  ;;  %v1902_v43 = vadd.f32 %v1898_v2, %v3123_v57  ;;  %2444 = vmatprep.subr.bf16.mxu1 %v2624_v0 }
0x14f9   :  { %1904 = vadd.xlane.f32.xlu1 %v1903_v40 }
0x14fa   :  { %v1906_v44 = vsel %vm74_vm1, %v1902_v43, 0.0 }
0x14fb   :  { %1907 = vadd.xlane.f32.xlu0 %v1906_v44 }
0x1586   :  { %v1905_v41 = vpop.xlane.xlu1 %1904 }
0x1587   :  { %v1909_v42 = vmul.f32 0.03125, %v1905_v41 }
0x1588   :  { %v1908_v45 = vpop.xlane.xlu0 %1907 }
0x1589   :  { %v1911_v20 = vsub.f32 %v1901_v39, %v1909_v42  ;;  %v1910_v46 = vmul.f32 0.03125, %v1908_v45 }
0x158b   :  { %v1912_v47 = vsub.f32 %v1902_v43, %v1910_v46  ;;  %v1913_v48 = vmul.f32 %v1911_v20, %v1911_v20 }
0x158d   :  { %v1915_v49 = vsel %vm74_vm1, %v1913_v48, 0.0  ;;  %v1914_v50 = vmul.f32 %v1912_v47, %v1912_v47 }
0x158e   :  { %1916 = vadd.xlane.f32.xlu1 %v1915_v49 }
0x158f   :  { %v1918_v51 = vsel %vm74_vm1, %v1914_v50, 0.0 }
0x1590   :  { %1919 = vadd.xlane.f32.xlu0 %v1918_v51 }
0x161b   :  { %v1917_v57 = vpop.xlane.xlu1 %1916 }
0x161c   :  { %v1921_v13 = vmul.f32 0.03125, %v1917_v57 }
0x161d   :  { %v1920_v31 = vpop.xlane.xlu0 %1919 }
0x161e   :  { %v1923_v35 = vadd.f32 1e-12, %v1921_v13  ;;  %v1922_v62 = vmul.f32 0.03125, %v1920_v31 }
0x1620   :  { %2614 = vrsqrt.f32 %v1923_v35  ;;  %v1924_v63 = vadd.f32 1e-12, %v1922_v62 }
0x1622   :  { %2616 = vrsqrt.f32 %v1924_v63 }
0x162a   :  { %v2615_v6 = vpop.eup %2614 }
0x162b   :  { %v1927_v7 = vmul.f32 %v2615_v6, %v1911_v20 }
0x162c   :  { %v2617_v8 = vpop.eup %2616 }
0x162d   :  { %v1933_v61 = vmul.f32 %v1932_v5, %v1927_v7  ;;  %v1928_v9 = vmul.f32 %v2617_v8, %v1912_v47 }
0x162f   :  { %v1934_v11 = vmul.f32 %v1932_v5, %v1928_v9  ;;  %v1939_v14 = vadd.f32 %v1938_v10, %v1933_v61 }
0x1631   :  { %v1940_v15 = vadd.f32 %v1938_v10, %v1934_v11 }
0x1633   :  { %v1945_v16 = vpack.c.bf16 %v1940_v15, %v1939_v14 }
0x1635   :  { %2441 = vmatmul.mubr.msk.bf16.vlgmr.msra.gmra.mrb[44].mxu1 %vm74_vm1, %v1945_v16 }
0x1636   :  { %2448 = vmatprep.mubr.msk.bf16.mxu1 %vm2625_vm0, %v2624_v0  ;;  %2445 = vmatpush3.bf16.msra.mxu1 %v2528_v52 }
0x1637   :  { %2446 = vmatprep.subr.bf16.mxu1 %v2624_v0  ;;  %v2174_v0 = vld [vmem:[%s3222_s12] ss:$0 sm:$0xff] }
0x163a   :  { %2447 = vmatpush3.bf16.msra.mxu1 %v2529_v59 }
0x1708   :  { %v2002_v56 = vpop.f32.mrb[44].mxu1 }
0x1709   :  { %v2003_v17 = vadd.f32 %v2170_v54, %v2002_v56  ;;  %v2442_v18 = vpop.f32.mrb[45].mxu1 }
0x170a   :  { %v2005_v19 = vpop.f32.mrb[46].mxu1 }
0x170b   :  { %v2006_v58 = vadd.f32 %v2170_v54, %v2005_v19  ;;  %v2443_v21 = vpop.f32.mrb[47].mxu1  ;;  %2618 = vtanh.f32 %v2003_v17 }
0x170d   :  { %2620 = vtanh.f32 %v2006_v58 }
0x1715   :  { %v2619_v3 = vpop.eup %2618 }
0x1717   :  { %v2621_v4 = vpop.eup %2620 }
0x1718   :  { %v2015_v22 = vpack.c.bf16 %v2621_v4, %v2619_v3 }
0x171a   :  { %2449 = vmatmul.mubr.msk.bf16.vlgmr.msra.gmra.mrb[48].mxu1 %vm74_vm1, %v2015_v22 }
0x17ed   :  { %v2072_v23 = vpop.f32.mrb[48].mxu1 }
0x17ee   :  { %v2073_v24 = vadd.f32 %v2174_v0, %v2072_v23  ;;  %v2450_v25 = vpop.f32.mrb[49].mxu1 }
0x17ef   :  { %v2075_v12 = vpop.f32.mrb[50].mxu1 }
0x17f0   :  { %2079 = vst [vmem:[%s3223_s13] sm:$0xff] %v2073_v24  ;;  %v2076_v27 = vadd.f32 %v2174_v0, %v2075_v12  ;;  %v2451_v28 = vpop.f32.mrb[51].mxu1 }
0x17f2   :  { %2080 = vst [vmem:[%s3223_s13 + $0x8] sm:$0xff] %v2076_v27 }

</bundles_post_ra>
